<compile_context>
chip_gen: v7x
topology: tpu7x:2x2x1
jax: 0.10.0
libtpu: 0.0.40
codegen_flags: <defaults>
</compile_context>

<pallas_src>
import functools

import jax
import jax.numpy as jnp
from jax import lax
from jax.experimental import pallas as pl
from jax.experimental.pallas import tpu as pltpu


def _bilinear_decoder_kernel(x_row_ref, rel_ref, x_col_ref, out_ref, inter_ref,
                             *, act):
    """Computes one (tm, tn) output tile of act(X @ R @ X^T).

    x_row_ref : (tm, D)  row block of X             (changes with grid axis i)
    rel_ref   : (D, D)   full relation matrix       (loop invariant)
    x_col_ref : (tn, D)  row block of X used as X^T (changes with grid axis j)
    out_ref   : (tm, tn) output tile
    inter_ref : (tm, D)  f32 scratch caching X_row @ R for the whole row block
    """
    # X_row @ R is identical for every column tile j -> compute it only once
    # per row block (j == 0) and keep it resident in VMEM scratch.
    # NOTE: this reuse is only valid because j is the innermost, sequentially
    # executed ("arbitrary") grid axis and restarts at 0 for every row block.
    @pl.when(pl.program_id(1) == 0)
    def _():
        inter_ref[...] = jnp.dot(
            x_row_ref[...], rel_ref[...], preferred_element_type=jnp.float32
        )

    # (X_row @ R) @ X_col^T in NT form: contract the feature axis of both
    # operands so the MXU handles the transposed contraction directly.
    # Feed native-dtype operands (no f32 upcast of X_col): for bf16 inputs,
    # round the cached f32 intermediate to bf16 so both matmul operands run at
    # full MXU rate; accumulation stays f32 via preferred_element_type.
    lhs = inter_ref[...]
    if x_col_ref.dtype != jnp.float32:
        lhs = lhs.astype(x_col_ref.dtype)
    rec = lax.dot_general(
        lhs,
        x_col_ref[...],
        dimension_numbers=(((1,), (1,)), ((), ())),
        preferred_element_type=jnp.float32,
    )

    # dropout p=0.0 (inference default); fused elementwise activation.
    out_ref[...] = act(rec).astype(out_ref.dtype)


def _vmem_capacity_bytes() -> int:
    """Trace-time VMEM capacity query; conservative 64 MiB fallback (v7x)."""
    try:
        info = pltpu.get_tpu_info()
        cap = getattr(info, "vmem_capacity_bytes", None)
        if cap:
            return int(cap)
    except Exception:
        pass
    return 64 * 1024 * 1024


def _select_tiles(n, d, in_itemsize, out_itemsize, vmem_cap):
    """Pick (tm, tn) given N, D, dtypes and the chip's VMEM capacity."""
    # Collapse the grid entirely for small problems: a single block removes
    # every per-pipeline-step overhead that otherwise dominates tiny kernels.
    whole = (2 * n * d * in_itemsize      # X streamed as both row and col operand
             + d * d * in_itemsize        # relation
             + n * n * out_itemsize       # output
             + n * d * 4)                 # f32 intermediate scratch
    if whole <= min(vmem_cap // 4, 16 * 1024 * 1024):
        return n, n

    def fits(tm, tn):
        need = (2 * tm * d * in_itemsize       # x_row (double-buffered worst case)
                + d * d * in_itemsize          # relation (single-buffered)
                + 2 * tn * d * in_itemsize     # x_col (double-buffered)
                + 2 * tm * tn * out_itemsize   # output (double-buffered)
                + tm * d * 4)                  # f32 inter scratch
        return need <= int(0.7 * vmem_cap)

    # Larger tm raises arithmetic intensity (~tm flops/byte on the X_col
    # stream) which v6e/v7x need to stay MXU-bound; tiles stay (8,128)-legal
    # because 512/256/128 are multiples of 128.
    candidates = [t for t in (512, 256, 128) if n % t == 0]
    if not candidates:
        # Oddly shaped N: fall back to a single block.
        # TODO(synk): pad ragged N to a multiple of 128 instead.
        return n, n
    for tm in candidates:
        for tn in candidates:
            if fits(tm, tn):
                return tm, tn
    return candidates[-1], candidates[-1]


def _build_call(n, d, tm, tn, in_dtype, out_dtype, act, *,
                single_buffer_invariants):
    in_itemsize = jnp.dtype(in_dtype).itemsize
    out_itemsize = jnp.dtype(out_dtype).itemsize
    grid = (n // tm, n // tn)  # j (column tiles) innermost: inter-scratch reuse

    rel_kwargs = {}
    xrow_kwargs = {}
    if single_buffer_invariants:
        # The relation never changes across the grid; x_row only changes on the
        # outer i axis and is only read at j == 0, so double-buffering either
        # just burns VMEM when the block is large.
        rel_kwargs["pipeline_mode"] = pl.Buffered(1)
        if tm * d * in_itemsize >= 2 * 1024 * 1024 and grid[1] > 1:
            xrow_kwargs["pipeline_mode"] = pl.Buffered(1)

    # Explicit VMEM budget for this tiling (+ generous headroom), clamped under
    # physical capacity.  Default scoped VMEM (16 MiB v5e / 32 MiB v6e,v7x) is
    # otherwise the binding constraint for large tiles.
    need = ((1 if "pipeline_mode" in xrow_kwargs else 2) * tm * d * in_itemsize
            + (1 if single_buffer_invariants else 2) * d * d * in_itemsize
            + 2 * tn * d * in_itemsize
            + 2 * tm * tn * out_itemsize
            + tm * d * 4)
    vmem_cap = _vmem_capacity_bytes()
    vmem_cap_usable = min(int(0.875 * vmem_cap), 100 * 1024 * 1024)
    vmem_limit = int(min(vmem_cap_usable,
                         max(2 * need + (8 << 20), 32 << 20)))

    # HBM traffic: X is read once as the row operand, re-streamed once per row
    # block as the column operand; relation once; output written once.
    bytes_accessed = (n * d * in_itemsize
                      + grid[0] * n * d * in_itemsize
                      + d * d * in_itemsize
                      + n * n * out_itemsize)
    flops = 2 * n * d * d + 2 * n * n * d

    kernel = functools.partial(_bilinear_decoder_kernel, act=act)

    return pl.pallas_call(
        kernel,
        out_shape=jax.ShapeDtypeStruct((n, n), out_dtype),
        grid_spec=pltpu.PrefetchScalarGridSpec(
            num_scalar_prefetch=0,
            grid=grid,
            in_specs=[
                pl.BlockSpec((tm, d), lambda i, j: (i, 0), **xrow_kwargs),  # X rows
                pl.BlockSpec((d, d), lambda i, j: (0, 0), **rel_kwargs),    # relation
                pl.BlockSpec((tn, d), lambda i, j: (j, 0)),                 # X cols (X^T)
            ],
            out_specs=pl.BlockSpec((tm, tn), lambda i, j: (i, j)),
            scratch_shapes=[pltpu.VMEM((tm, d), jnp.float32)],  # caches X_row @ R
        ),
        compiler_params=pltpu.CompilerParams(
            dimension_semantics=("parallel", "arbitrary"),
            vmem_limit_bytes=vmem_limit,
        ),
        cost_estimate=pl.CostEstimate(
            flops=flops, transcendentals=0, bytes_accessed=bytes_accessed
        ),
    )


def bilinear_decoder(inputs: jax.Array, relation: jax.Array, *,
                     tm: int | None = None, tn: int | None = None,
                     dropout_p: float = 0.0, act=None) -> jax.Array:
    """Pallas BilinearDecoder.forward: act(dropout(X) @ R @ dropout(X)^T).

    Matches the PyTorch module's inference defaults (dropout p=0.0, identity
    act).  `act` may be any traceable elementwise function; it is fused into
    the output-tile store.
    """
    if dropout_p != 0.0:
        # TODO(synk): fuse training-mode dropout via pltpu.prng_seed/prng_random_bits.
        raise NotImplementedError("only dropout_p == 0.0 (inference) is supported")
    if act is None:
        act = lambda x: x

    n, d = inputs.shape
    assert relation.shape == (d, d), "relation must be (input_dim, input_dim)"

    in_itemsize = jnp.dtype(inputs.dtype).itemsize
    vmem_cap = _vmem_capacity_bytes()
    if tm is None or tn is None:
        auto_tm, auto_tn = _select_tiles(n, d, in_itemsize, in_itemsize, vmem_cap)
        tm = auto_tm if tm is None else min(tm, n)
        tn = auto_tn if tn is None else min(tn, n)
    else:
        tm = min(tm, n)
        tn = min(tn, n)
    assert n % tm == 0 and n % tn == 0, (
        "row/col tiles must divide N")  # TODO(synk): pad ragged N instead.

    args = (inputs, relation, inputs)
    try:
        call = _build_call(n, d, tm, tn, inputs.dtype, inputs.dtype, act,
                           single_buffer_invariants=True)
        return call(*args)
    except Exception as e:
        # Only fall back to default double buffering when the failure is
        # clearly about the Buffered(1) pipeline mode; re-raise real errors.
        msg = str(e)
        if ("Buffered" not in msg and "pipeline_mode" not in msg
                and "buffer" not in msg.lower()):
            raise
        call = _build_call(n, d, tm, tn, inputs.dtype, inputs.dtype, act,
                           single_buffer_invariants=False)
        return call(*args)


def xavier_uniform(key, shape, dtype=jnp.float32):
    fan_in, fan_out = shape[0], shape[1]
    bound = (6.0 / (fan_in + fan_out)) ** 0.5
    return jax.random.uniform(key, shape, dtype=dtype, minval=-bound, maxval=bound)


if __name__ == "__main__":
    key = jax.random.PRNGKey(0)
    k_x, k_rel = jax.random.split(key)

    # Small shapes consistent with the module: N nodes x D-dim embeddings.
    N, D = 512, 128
    inputs = jax.random.normal(k_x, (N, D), dtype=jnp.float32)
    # Deterministic xavier_uniform init for the relation parameter (as in __init__).
    relation = xavier_uniform(k_rel, (D, D))

    # Reference: PyTorch module with dropout p=0.0 and identity activation.
    ref = (inputs @ relation) @ inputs.T

    # Auto-tiled path: small problem -> grid collapses to a single block.
    out = jax.block_until_ready(bilinear_decoder(inputs, relation))
    assert out.shape == (N, N)
    assert jnp.allclose(out, ref, atol=1e-3, rtol=1e-3)

    # Explicit-tile path: grid (2, 2) exercises the per-row-block scratch reuse
    # and the 2-D pipelined tiling used for large N.
    out_tiled = jax.block_until_ready(
        bilinear_decoder(inputs, relation, tm=256, tn=256))
    assert jnp.allclose(out_tiled, ref, atol=1e-3, rtol=1e-3)

    print("KERNEL_OK")
</pallas_src>

<mosaic_0001>
module attributes {stable_mosaic.version = 11 : i64} {
  func.func @_bilinear_decoder_kernel(%arg0: i32, %arg1: i32, %arg2: memref<512x128xf32, #tpu.memory_space<vmem>>, %arg3: memref<128x128xf32, #tpu.memory_space<vmem>>, %arg4: memref<512x128xf32, #tpu.memory_space<vmem>>, %arg5: memref<512x512xf32, #tpu.memory_space<vmem>>, %arg6: memref<512x128xf32, #tpu.memory_space<vmem>>) attributes {dimension_semantics = [#tpu.dimension_semantics<parallel>, #tpu.dimension_semantics<arbitrary>], iteration_bounds = array<i64: 1, 1>, scalar_prefetch = 0 : i64, scratch_operands = 1 : i64, tpu.core_type = #tpu.core_type<tc>, window_params = [{transform_indices = @transform_0, window_bounds = array<i64: 512, 128>}, {pipeline_mode = #tpu.pipeline_mode<synchronous>, transform_indices = @transform_1, window_bounds = array<i64: 128, 128>}, {transform_indices = @transform_2, window_bounds = array<i64: 512, 128>}, {transform_indices = @transform_3, window_bounds = array<i64: 512, 512>}]} {
    %c0_i32 = arith.constant 0 : i32
    %0 = arith.cmpi eq, %arg1, %c0_i32 : i32
    %1 = arith.extui %0 : i1 to i32
    %c0_i32_0 = arith.constant 0 : i32
    %2 = arith.cmpi ne, %1, %c0_i32_0 : i32
    scf.if %2 {
      %c0_6 = arith.constant 0 : index
      %c0_7 = arith.constant 0 : index
      %7 = vector.load %arg2[%c0_6, %c0_7] : memref<512x128xf32, #tpu.memory_space<vmem>>, vector<512x128xf32>
      %c0_8 = arith.constant 0 : index
      %c0_9 = arith.constant 0 : index
      %8 = vector.load %arg3[%c0_8, %c0_9] : memref<128x128xf32, #tpu.memory_space<vmem>>, vector<128x128xf32>
      %cst_10 = arith.constant dense<0.000000e+00> : vector<512x128xf32>
      %9 = tpu.matmul %7, %8, %cst_10 {dimension_numbers = #tpu.dot_dimension_numbers<[1], [0], [0], [1], [0, 0, 1, 1], [], []>} : vector<512x128xf32>, vector<128x128xf32>, vector<512x128xf32> -> vector<512x128xf32>
      %c0_11 = arith.constant 0 : index
      %c0_12 = arith.constant 0 : index
      %10 = vector.load %arg6[%c0_11, %c0_12] : memref<512x128xf32, #tpu.memory_space<vmem>>, vector<512x128xf32>
      tpu.vector_store %arg6[%c0_11, %c0_12], %9 {strides = array<i32>} : memref<512x128xf32, #tpu.memory_space<vmem>>, vector<512x128xf32>,
    } else {
    }
    %c0 = arith.constant 0 : index
    %c0_1 = arith.constant 0 : index
    %3 = vector.load %arg6[%c0, %c0_1] : memref<512x128xf32, #tpu.memory_space<vmem>>, vector<512x128xf32>
    %c0_2 = arith.constant 0 : index
    %c0_3 = arith.constant 0 : index
    %4 = vector.load %arg4[%c0_2, %c0_3] : memref<512x128xf32, #tpu.memory_space<vmem>>, vector<512x128xf32>
    %cst = arith.constant dense<0.000000e+00> : vector<512x512xf32>
    %5 = tpu.matmul %3, %4, %cst {dimension_numbers = #tpu.dot_dimension_numbers<[1], [1], [0], [0], [0, 0, 1, 0], [], []>} : vector<512x128xf32>, vector<512x128xf32>, vector<512x512xf32> -> vector<512x512xf32>
    %c0_4 = arith.constant 0 : index
    %c0_5 = arith.constant 0 : index
    %6 = vector.load %arg5[%c0_4, %c0_5] : memref<512x512xf32, #tpu.memory_space<vmem>>, vector<512x512xf32>
    tpu.vector_store %arg5[%c0_4, %c0_5], %5 {strides = array<i32>} : memref<512x512xf32, #tpu.memory_space<vmem>>, vector<512x512xf32>,
    return
  }
  func.func @transform_0(%arg0: i32, %arg1: i32) -> (i32, i32) {
    %c0_i32 = arith.constant 0 : i32
    %c0_i32_0 = arith.constant 0 : i32
    return %arg0, %c0_i32 : i32, i32
  }
  func.func @transform_1(%arg0: i32, %arg1: i32) -> (i32, i32) {
    %c0_i32 = arith.constant 0 : i32
    %c0_i32_0 = arith.constant 0 : i32
    %c0_i32_1 = arith.constant 0 : i32
    return %c0_i32, %c0_i32_0 : i32, i32
  }
  func.func @transform_2(%arg0: i32, %arg1: i32) -> (i32, i32) {
    %c0_i32 = arith.constant 0 : i32
    %c0_i32_0 = arith.constant 0 : i32
    return %arg1, %c0_i32 : i32, i32
  }
  func.func @transform_3(%arg0: i32, %arg1: i32) -> (i32, i32) {
    %c0_i32 = arith.constant 0 : i32
    return %arg0, %arg1 : i32, i32
  }
}

</mosaic_0001>

<bundles_post_ra>
// kernel: tpu_custom_call.1
= control target key start
LH: loop header
LB: loop body
LE: loop exit
PB: predicated region body
PF: predicated region fallthrough
CT: control target
= control target key end

     0   :  { %8 = vsyncpa [#allocation4], 0  ;;  %s3011_s0 = inlined_call_operand.hbm [shape: f32[512,128], index: 0, kind: input, shape index: {}]   ;;  %s3012_s1 = inlined_call_operand.hbm [shape: f32[128,128], index: 1, kind: input, shape index: {}]   ;;  %s3013_s2 = inlined_call_operand.hbm [shape: f32[512,128], index: 2, kind: input, shape index: {}]   ;;  %s3014_s3 = inlined_call_operand.hbm [shape: f32[512,512], index: 3, kind: output, shape index: {}]  }
   0x1   :  { %9 = vsyncpa [#allocation7], 0 }
   0x2   :  { %10 = vsyncpa [#allocation5], 0  ;;  %s2631_s12 = smov [#allocation6]   ;;  %s2632_s14 = smov [#allocation3]  }
   0x3   :  { %s28_s13 = sshll.u32 %s2631_s12, 4  ;;  %s16_s15 = sshll.u32 %s2632_s14, 4  ;;  %s29_s13 = int_to_ptr.vmem [resolvable:$true] %s28_s13  ;;  %s2659_s15 = int_to_ptr.vmem [resolvable:$true] %s16_s15 }
   0x4   :  { %s2537_s18 = scalar_lea.hbm %s3012_s1, 2048 }
   0x5   :  { %p2538_p0 = scmp.ne.s32.totalorder %s3012_s1, %s2537_s18  ;;  %p2541_p1 = scmp.lt.u32.totalorder %s2537_s18, %s3012_s1 }
   0x7   :  { %p2543_p2 = pnand %p2541_p1, %p2538_p0 }
   0x9   :  { %2546 = shalt.err (!%p2543_p2)
}
   0xa   :  { %s2547_s23 = scalar_lea.vmem %s29_s13, 2048  ;;  %p2552_p4 = scmp.lt.s32.totalorder %s29_s13, %s29_s13 }
   0xb   :  { %p2548_p3 = scmp.ne.s32.totalorder %s29_s13, %s2547_s23  ;;  %p2553_p5 = scmp.lt.s32.totalorder %s2547_s23, %s2547_s23 }
   0xd   :  { %p2554_p6 = por %p2553_p5, %p2552_p4 }
   0xf   :  { %p2555_p7 = pnand %p2554_p6, %p2548_p3 }
  0x11   :  { %2558 = shalt.err (!%p2555_p7)
}
  0x12   :  { %s2633_s24 = smov 128   ;;  %s2634_s25 = smov 8  }
  0x13   :  { %34 = dma.hbm_to_vmem [thread:$0]  %s3012_s1, 2048, %s29_s13, [#allocation7], %s2633_s24, %s2633_s24, %s2634_s25  }
  0x14   :  { %s2559_s30 = scalar_lea.hbm %s3011_s0, 8192 }
  0x15   :  { %p2560_p8 = scmp.ne.s32.totalorder %s3011_s0, %s2559_s30  ;;  %p2563_p9 = scmp.lt.u32.totalorder %s2559_s30, %s3011_s0 }
  0x17   :  { %p2565_p10 = pnand %p2563_p9, %p2560_p8 }
  0x19   :  { %2568 = shalt.err (!%p2565_p10)
}
  0x1a   :  { %s2569_s8 = scalar_lea.vmem %s2659_s15, 8192  ;;  %p2574_p12 = scmp.lt.s32.totalorder %s2659_s15, %s2659_s15 }
  0x1b   :  { %p2570_p11 = scmp.ne.s32.totalorder %s2659_s15, %s2569_s8  ;;  %p2575_p13 = scmp.lt.s32.totalorder %s2569_s8, %s2569_s8 }
  0x1d   :  { %p2576_p0 = por %p2575_p13, %p2574_p12 }
  0x1f   :  { %p2577_p1 = pnand %p2576_p0, %p2570_p11 }
  0x21   :  { %2580 = shalt.err (!%p2577_p1)
}
  0x22   :  { %22 = dma.hbm_to_vmem [thread:$0]  %s3011_s0, 8192, %s2659_s15, [#allocation4], %s2633_s24, %s2633_s24, %s2634_s25  }
  0x23   :  { %s2635_s10 = smov [#allocation8]   ;;  %s2581_s14 = scalar_lea.hbm %s3013_s2, 8192 }
  0x24   :  { %s40_s11 = sshll.u32 %s2635_s10, 4  ;;  %p2582_p2 = scmp.ne.s32.totalorder %s3013_s2, %s2581_s14  ;;  %s41_s11 = int_to_ptr.vmem [resolvable:$true] %s40_s11 }
  0x25   :  { %p2585_p3 = scmp.lt.u32.totalorder %s2581_s14, %s3013_s2 }
  0x27   :  { %p2587_p4 = pnand %p2585_p3, %p2582_p2 }
  0x29   :  { %2590 = shalt.err (!%p2587_p4)
}
  0x2a   :  { %s2591_s20 = scalar_lea.vmem %s41_s11, 8192  ;;  %p2596_p6 = scmp.lt.s32.totalorder %s41_s11, %s41_s11 }
  0x2b   :  { %p2592_p5 = scmp.ne.s32.totalorder %s41_s11, %s2591_s20  ;;  %p2597_p7 = scmp.lt.s32.totalorder %s2591_s20, %s2591_s20 }
  0x2d   :  { %p2598_p8 = por %p2597_p7, %p2596_p6 }
  0x2f   :  { %p2599_p9 = pnand %p2598_p8, %p2592_p5 }
  0x31   :  { %2602 = shalt.err (!%p2599_p9)
}
  0x32   :  { %46 = dma.hbm_to_vmem [thread:$0]  %s3013_s2, 8192, %s41_s11, [#allocation7], %s2633_s24, %s2633_s24, %s2634_s25  }
  0x33   :  { %2625 = dma.done.wait [#allocation4], 8192  }
  0x34   :  { %2626 = vsyncadd [#allocation4], 4294959104 }
  0x35   :  { %2627 = dma.done.wait [#allocation7], 10240  }
  0x36   :  { %2628 = vsyncadd [#allocation7], 4294957056  ;;  %v124_v0 = vld [vmem:[#allocation6] sm:$0xff]  ;;  %v125_v1 = vld [vmem:[#allocation6 + $0x8] sm:$0xff]  ;;  %s2636_s2 = smov [#allocation9]  }
  0x37   :  { %v126_v2 = vld [vmem:[#allocation6 + $0x10] sm:$0xff]  ;;  %v2417_v3 = vpack.c.bf16 %v125_v1, %v124_v0  ;;  %v127_v4 = vld [vmem:[#allocation6 + $0x18] sm:$0xff]  ;;  %v128_v6 = vld [vmem:[#allocation6 + $0x20] sm:$0xff]  ;;  %s1876_s21 = sshll.u32 %s2636_s2, 4  ;;  %s1877_s21 = int_to_ptr.vmem [resolvable:$true] %s1876_s21 }
  0x38   :  { %v2421_v5 = vpack.c.bf16 %v127_v4, %v126_v2  ;;  %v129_v7 = vld [vmem:[#allocation6 + $0x28] sm:$0xff]  ;;  %v60_v9 = vld [vmem:[#allocation3] sm:$0xff]  ;;  %v130_v10 = vld [vmem:[#allocation6 + $0x30] sm:$0xff]  ;;  %s2603_s22 = scalar_lea.vmem %s1877_s21, 32768  ;;  %p2608_p11 = scmp.lt.s32.totalorder %s1877_s21, %s1877_s21 }
  0x39   :  { %2418 = vmatprep.subr.bf16.mxu0 %v2417_v3  ;;  %2513 = vmatprep.subr.bf16.mxu1 %v2417_v3  ;;  %v2425_v8 = vpack.c.bf16 %v129_v7, %v128_v6  ;;  %v131_v11 = vld [vmem:[#allocation6 + $0x38] sm:$0xff]  ;;  %v132_v13 = vld [vmem:[#allocation6 + $0x40] sm:$0xff]  ;;  %v133_v14 = vld [vmem:[#allocation6 + $0x48] sm:$0xff]  ;;  %p2604_p10 = scmp.ne.s32.totalorder %s1877_s21, %s2603_s22  ;;  %p2609_p12 = scmp.lt.s32.totalorder %s2603_s22, %s2603_s22 }
  0x3a   :  { %2420 = vmatpush3.bf16.msra.mxu0 %v2417_v3  ;;  %2521 = vmatpush3.bf16.msra.mxu1 %v2417_v3  ;;  %v2429_v12 = vpack.c.bf16 %v131_v11, %v130_v10  ;;  %v2433_v15 = vpack.c.bf16 %v133_v14, %v132_v13  ;;  %v134_v16 = vld [vmem:[#allocation6 + $0x50] sm:$0xff]  ;;  %v135_v17 = vld [vmem:[#allocation6 + $0x58] sm:$0xff]  ;;  %v92_v18 = vld [vmem:[#allocation3 + $0x100] sm:$0xff] }
  0x3b   :  { %2422 = vmatprep.subr.bf16.mxu0 %v2421_v5  ;;  %2514 = vmatprep.subr.bf16.mxu1 %v2421_v5  ;;  %v2437_v19 = vpack.c.bf16 %v135_v17, %v134_v16  ;;  %v136_v20 = vld [vmem:[#allocation6 + $0x60] sm:$0xff]  ;;  %v137_v21 = vld [vmem:[#allocation6 + $0x68] sm:$0xff]  ;;  %v138_v23 = vld [vmem:[#allocation6 + $0x70] sm:$0xff]  ;;  %p2610_p13 = por %p2609_p12, %p2608_p11 }
  0x3c   :  { %2321 = vmatprep.mubr.f32.mxu0 %v60_v9  ;;  %2369 = vmatprep.mubr.f32.mxu1 %v92_v18  ;;  %v2441_v22 = vpack.c.bf16 %v137_v21, %v136_v20  ;;  %v139_v24 = vld [vmem:[#allocation6 + $0x78] sm:$0xff]  ;;  %v669_v26 = vld [vmem:[#allocation8 + $0x80] sm:$0xff]  ;;  %v670_v27 = vld [vmem:[#allocation8 + $0x88] sm:$0xff] }
  0x3d   :  { %v2445_v25 = vpack.c.bf16 %v139_v24, %v138_v23  ;;  %v701_v28 = vld [vmem:[#allocation8 + $0x180] sm:$0xff]  ;;  %v702_v29 = vld [vmem:[#allocation8 + $0x188] sm:$0xff]  ;;  %v2449_v30 = vpack.c.bf16 %v670_v27, %v669_v26  ;;  %v62_v33 = vld [vmem:[#allocation3 + $0x10] sm:$0xff]  ;;  %p2611_p0 = pnand %p2610_p13, %p2604_p10 }
  0x3e   :  { %2424 = vmatpush3.bf16.msra.mxu0 %v2421_v5  ;;  %2522 = vmatpush3.bf16.msra.mxu1 %v2421_v5  ;;  %v2481_v31 = vpack.c.bf16 %v702_v29, %v701_v28  ;;  %v61_v32 = vld [vmem:[#allocation3 + $0x8] sm:$0xff]  ;;  %v94_v35 = vld [vmem:[#allocation3 + $0x110] sm:$0xff]  ;;  %v653_v36 = vld [vmem:[#allocation8] sm:$0xff] }
  0x3f   :  { %2426 = vmatprep.subr.bf16.mxu0 %v2425_v8  ;;  %2515 = vmatprep.subr.bf16.mxu1 %v2425_v8  ;;  %v93_v34 = vld [vmem:[#allocation3 + $0x108] sm:$0xff]  ;;  %v685_v38 = vld [vmem:[#allocation8 + $0x100] sm:$0xff]  ;;  %v671_v40 = vld [vmem:[#allocation8 + $0x90] sm:$0xff] }
  0x40   :  { %v654_v37 = vld [vmem:[#allocation8 + $0x8] sm:$0xff]  ;;  %v672_v41 = vld [vmem:[#allocation8 + $0x98] sm:$0xff]  ;;  %v703_v42 = vld [vmem:[#allocation8 + $0x190] sm:$0xff] }
  0x41   :  { %v686_v39 = vld [vmem:[#allocation8 + $0x108] sm:$0xff]  ;;  %v704_v43 = vld [vmem:[#allocation8 + $0x198] sm:$0xff]  ;;  %v64_v46 = vld [vmem:[#allocation3 + $0x20] sm:$0xff]  ;;  %v2451_v48 = vpack.c.bf16 %v654_v37, %v653_v36  ;;  %v2453_v50 = vpack.c.bf16 %v672_v41, %v671_v40 }
  0x42   :  { %2428 = vmatpush3.bf16.msra.mxu0 %v2425_v8  ;;  %2523 = vmatpush3.bf16.msra.mxu1 %v2425_v8  ;;  %v63_v44 = vld [vmem:[#allocation3 + $0x18] sm:$0xff]  ;;  %v96_v47 = vld [vmem:[#allocation3 + $0x120] sm:$0xff]  ;;  %v2483_v49 = vpack.c.bf16 %v686_v39, %v685_v38  ;;  %v2485_v51 = vpack.c.bf16 %v704_v43, %v703_v42  ;;  %v65_v52 = vld [vmem:[#allocation3 + $0x28] sm:$0xff] }
  0x43   :  { %2430 = vmatprep.subr.bf16.mxu0 %v2429_v12  ;;  %2516 = vmatprep.subr.bf16.mxu1 %v2429_v12  ;;  %v95_v45 = vld [vmem:[#allocation3 + $0x118] sm:$0xff]  ;;  %v66_v53 = vld [vmem:[#allocation3 + $0x30] sm:$0xff]  ;;  %v97_v54 = vld [vmem:[#allocation3 + $0x128] sm:$0xff] }
  0x44   :  { %v98_v55 = vld [vmem:[#allocation3 + $0x130] sm:$0xff]  ;;  %v656_v57 = vld [vmem:[#allocation8 + $0x18] sm:$0xff]  ;;  %v673_v60 = vld [vmem:[#allocation8 + $0xa0] sm:$0xff] }
  0x45   :  { %v655_v56 = vld [vmem:[#allocation8 + $0x10] sm:$0xff]  ;;  %v688_v59 = vld [vmem:[#allocation8 + $0x118] sm:$0xff]  ;;  %v674_v61 = vld [vmem:[#allocation8 + $0xa8] sm:$0xff] }
  0x46   :  { %2432 = vmatpush3.bf16.msra.mxu0 %v2429_v12  ;;  %2524 = vmatpush3.bf16.msra.mxu1 %v2429_v12  ;;  %v687_v58 = vld [vmem:[#allocation8 + $0x110] sm:$0xff]  ;;  %v705_v62 = vld [vmem:[#allocation8 + $0x1a0] sm:$0xff]  ;;  %v706_v63 = vld [vmem:[#allocation8 + $0x1a8] sm:$0xff]  ;;  %v2455_v4 = vpack.c.bf16 %v656_v57, %v655_v56  ;;  %v2457_v6 = vpack.c.bf16 %v674_v61, %v673_v60 }
  0x47   :  { %2434 = vmatprep.subr.bf16.mxu0 %v2433_v15  ;;  %2517 = vmatprep.subr.bf16.mxu1 %v2433_v15  ;;  %v67_v0 = vld [vmem:[#allocation3 + $0x38] sm:$0xff]  ;;  %v68_v2 = vld [vmem:[#allocation3 + $0x40] sm:$0xff]  ;;  %v2487_v5 = vpack.c.bf16 %v688_v59, %v687_v58  ;;  %v2489_v7 = vpack.c.bf16 %v706_v63, %v705_v62  ;;  %v69_v8 = vld [vmem:[#allocation3 + $0x48] sm:$0xff] }
  0x48   :  { %v99_v1 = vld [vmem:[#allocation3 + $0x138] sm:$0xff]  ;;  %v100_v3 = vld [vmem:[#allocation3 + $0x140] sm:$0xff]  ;;  %v70_v9 = vld [vmem:[#allocation3 + $0x50] sm:$0xff] }
  0x49   :  { %v101_v10 = vld [vmem:[#allocation3 + $0x148] sm:$0xff]  ;;  %v102_v11 = vld [vmem:[#allocation3 + $0x150] sm:$0xff]  ;;  %v657_v12 = vld [vmem:[#allocation8 + $0x20] sm:$0xff] }
  0x4a   :  { %2436 = vmatpush3.bf16.msra.mxu0 %v2433_v15  ;;  %2525 = vmatpush3.bf16.msra.mxu1 %v2433_v15  ;;  %v658_v13 = vld [vmem:[#allocation8 + $0x28] sm:$0xff]  ;;  %v689_v14 = vld [vmem:[#allocation8 + $0x120] sm:$0xff]  ;;  %v675_v16 = vld [vmem:[#allocation8 + $0xb0] sm:$0xff] }
  0x4b   :  { %2438 = vmatprep.subr.bf16.mxu0 %v2437_v19  ;;  %2518 = vmatprep.subr.bf16.mxu1 %v2437_v19  ;;  %v690_v15 = vld [vmem:[#allocation8 + $0x128] sm:$0xff]  ;;  %v676_v17 = vld [vmem:[#allocation8 + $0xb8] sm:$0xff]  ;;  %v707_v18 = vld [vmem:[#allocation8 + $0x1b0] sm:$0xff]  ;;  %v2459_v23 = vpack.c.bf16 %v658_v13, %v657_v12 }
  0x4c   :  { %v71_v20 = vld [vmem:[#allocation3 + $0x58] sm:$0xff]  ;;  %v2491_v24 = vpack.c.bf16 %v690_v15, %v689_v14  ;;  %v2461_v26 = vpack.c.bf16 %v676_v17, %v675_v16  ;;  %v73_v28 = vld [vmem:[#allocation3 + $0x68] sm:$0xff]  ;;  %v74_v29 = vld [vmem:[#allocation3 + $0x70] sm:$0xff] }
  0x4d   :  { %v103_v21 = vld [vmem:[#allocation3 + $0x158] sm:$0xff]  ;;  %v677_v36 = vld [vmem:[#allocation8 + $0xc0] sm:$0xff]  ;;  %v678_v37 = vld [vmem:[#allocation8 + $0xc8] sm:$0xff] }
  0x4e   :  { %2440 = vmatpush3.bf16.msra.mxu0 %v2437_v19  ;;  %2526 = vmatpush3.bf16.msra.mxu1 %v2437_v19  ;;  %v708_v19 = vld [vmem:[#allocation8 + $0x1b8] sm:$0xff]  ;;  %v709_v38 = vld [vmem:[#allocation8 + $0x1c0] sm:$0xff]  ;;  %v710_v39 = vld [vmem:[#allocation8 + $0x1c8] sm:$0xff] }
  0x4f   :  { %2442 = vmatprep.subr.bf16.mxu0 %v2441_v22  ;;  %2519 = vmatprep.subr.bf16.mxu1 %v2441_v22  ;;  %v2493_v27 = vpack.c.bf16 %v708_v19, %v707_v18  ;;  %v75_v40 = vld [vmem:[#allocation3 + $0x78] sm:$0xff]  ;;  %v76_v42 = vld [vmem:[#allocation3 + $0x80] sm:$0xff]  ;;  %v679_v56 = vld [vmem:[#allocation8 + $0xd0] sm:$0xff] }
  0x50   :  { %v107_v41 = vld [vmem:[#allocation3 + $0x178] sm:$0xff]  ;;  %v711_v58 = vld [vmem:[#allocation8 + $0x1d0] sm:$0xff]  ;;  %v80_v62 = vld [vmem:[#allocation3 + $0xa0] sm:$0xff] }
  0x51   :  { %v680_v57 = vld [vmem:[#allocation8 + $0xd8] sm:$0xff]  ;;  %v681_v12 = vld [vmem:[#allocation8 + $0xe0] sm:$0xff]  ;;  %v682_v13 = vld [vmem:[#allocation8 + $0xe8] sm:$0xff] }
  0x52   :  { %2444 = vmatpush3.bf16.msra.mxu0 %v2441_v22  ;;  %2527 = vmatpush3.bf16.msra.mxu1 %v2441_v22  ;;  %v72_v22 = vld [vmem:[#allocation3 + $0x60] sm:$0xff]  ;;  %v712_v59 = vld [vmem:[#allocation8 + $0x1d8] sm:$0xff]  ;;  %v714_v15 = vld [vmem:[#allocation8 + $0x1e8] sm:$0xff] }
  0x53   :  { %2446 = vmatprep.subr.bf16.mxu0 %v2445_v25  ;;  %2520 = vmatprep.subr.bf16.mxu1 %v2445_v25  ;;  %v79_v60 = vld [vmem:[#allocation3 + $0x98] sm:$0xff]  ;;  %v713_v14 = vld [vmem:[#allocation8 + $0x1e0] sm:$0xff] }
  0x54   :  { %v111_v61 = vld [vmem:[#allocation3 + $0x198] sm:$0xff]  ;;  %v84_v18 = vld [vmem:[#allocation3 + $0xc0] sm:$0xff] }
  0x55   :  { %v83_v16 = vld [vmem:[#allocation3 + $0xb8] sm:$0xff] }
  0x56   :  { %2448 = vmatpush3.bf16.msra.mxu0 %v2445_v25  ;;  %2528 = vmatpush3.bf16.msra.mxu1 %v2445_v25  ;;  %v104_v25 = vld [vmem:[#allocation3 + $0x160] sm:$0xff]  ;;  %v115_v17 = vld [vmem:[#allocation3 + $0x1b8] sm:$0xff] }
  0x57   :  { %2450 = vmatprep.subr.bf16.mxu1 %v2449_v30  ;;  %2482 = vmatprep.subr.bf16.mxu0 %v2481_v31  ;;  %v105_v30 = vld [vmem:[#allocation3 + $0x168] sm:$0xff]  ;;  %v659_v31 = vld [vmem:[#allocation8 + $0x30] sm:$0xff] }
  0x59   :  { %2322 = vmatmul.mubr.f32.vlgmr.msra.gmra.mrb[0].mxu0 %v61_v32  ;;  %2370 = vmatmul.mubr.f32.vlgmr.msra.gmra.mrb[0].mxu1 %v93_v34  ;;  %v660_v32 = vld [vmem:[#allocation8 + $0x38] sm:$0xff]  ;;  %v691_v34 = vld [vmem:[#allocation8 + $0x130] sm:$0xff] }
  0x5a   :  { %2324 = vmatprep.mubr.f32.mxu0 %v62_v33  ;;  %2372 = vmatprep.mubr.f32.mxu1 %v94_v35  ;;  %v106_v33 = vld [vmem:[#allocation3 + $0x170] sm:$0xff]  ;;  %v692_v35 = vld [vmem:[#allocation8 + $0x138] sm:$0xff]  ;;  %v2463_v43 = vpack.c.bf16 %v660_v32, %v659_v31  ;;  %v698_v31 = vld [vmem:[#allocation8 + $0x168] sm:$0xff] }
  0x5b   :  { %v683_v32 = vld [vmem:[#allocation8 + $0xf0] sm:$0xff] }
  0x5d   :  { %2325 = vmatmul.mubr.f32.gmra.mrb[2].mxu0 %v63_v44  ;;  %2373 = vmatmul.mubr.f32.gmra.mrb[2].mxu1 %v95_v45  ;;  %v2495_v44 = vpack.c.bf16 %v692_v35, %v691_v34  ;;  %v108_v45 = vld [vmem:[#allocation3 + $0x180] sm:$0xff]  ;;  %v715_v34 = vld [vmem:[#allocation8 + $0x1f0] sm:$0xff]  ;;  %v716_v35 = vld [vmem:[#allocation8 + $0x1f8] sm:$0xff] }
  0x5e   :  { %2327 = vmatprep.mubr.f32.mxu0 %v64_v46  ;;  %2375 = vmatprep.mubr.f32.mxu1 %v96_v47  ;;  %v2465_v46 = vpack.c.bf16 %v678_v37, %v677_v36  ;;  %v2497_v47 = vpack.c.bf16 %v710_v39, %v709_v38  ;;  %v87_v36 = vld [vmem:[#allocation3 + $0xd8] sm:$0xff]  ;;  %v88_v38 = vld [vmem:[#allocation3 + $0xe0] sm:$0xff] }
  0x5f   :  { %2452 = vmatpush3.bf16.xpose.msra.mxu1 %v2451_v48  ;;  %2484 = vmatpush3.bf16.xpose.msra.mxu0 %v2483_v49  ;;  %v77_v48 = vld [vmem:[#allocation3 + $0x88] sm:$0xff]  ;;  %v78_v49 = vld [vmem:[#allocation3 + $0x90] sm:$0xff]  ;;  %v119_v37 = vld [vmem:[#allocation3 + $0x1d8] sm:$0xff] }
  0x60   :  { %2454 = vmatprep.subr.bf16.mxu1 %v2453_v50  ;;  %2486 = vmatprep.subr.bf16.mxu0 %v2485_v51  ;;  %v109_v50 = vld [vmem:[#allocation3 + $0x188] sm:$0xff]  ;;  %v661_v51 = vld [vmem:[#allocation8 + $0x40] sm:$0xff] }
  0x61   :  { %2328 = vmatmul.mubr.f32.gmra.mrb[4].mxu0 %v65_v52  ;;  %2376 = vmatmul.mubr.f32.gmra.mrb[4].mxu1 %v97_v54  ;;  %v662_v52 = vld [vmem:[#allocation8 + $0x48] sm:$0xff]  ;;  %v693_v54 = vld [vmem:[#allocation8 + $0x140] sm:$0xff] }
  0x62   :  { %2330 = vmatprep.mubr.f32.mxu0 %v66_v53  ;;  %2378 = vmatprep.mubr.f32.mxu1 %v98_v55  ;;  %v110_v53 = vld [vmem:[#allocation3 + $0x190] sm:$0xff]  ;;  %v694_v55 = vld [vmem:[#allocation8 + $0x148] sm:$0xff]  ;;  %v2467_v63 = vpack.c.bf16 %v662_v52, %v661_v51  ;;  %v700_v51 = vld [vmem:[#allocation8 + $0x178] sm:$0xff] }
  0x63   :  { %v91_v52 = vld [vmem:[#allocation3 + $0xf8] sm:$0xff] }
  0x65   :  { %2331 = vmatmul.mubr.f32.gmra.mrb[6].mxu0 %v67_v0  ;;  %2379 = vmatmul.mubr.f32.gmra.mrb[6].mxu1 %v99_v1  ;;  %v2499_v0 = vpack.c.bf16 %v694_v55, %v693_v54  ;;  %v112_v1 = vld [vmem:[#allocation3 + $0x1a0] sm:$0xff] }
  0x66   :  { %2333 = vmatprep.mubr.f32.mxu0 %v68_v2  ;;  %2381 = vmatprep.mubr.f32.mxu1 %v100_v3  ;;  %v2469_v2 = vpack.c.bf16 %v680_v57, %v679_v56  ;;  %v2501_v3 = vpack.c.bf16 %v712_v59, %v711_v58 }
  0x67   :  { %2456 = vmatpush3.bf16.xpose.msra.mxu1 %v2455_v4  ;;  %2488 = vmatpush3.bf16.xpose.msra.mxu0 %v2487_v5  ;;  %v81_v4 = vld [vmem:[#allocation3 + $0xa8] sm:$0xff]  ;;  %v82_v5 = vld [vmem:[#allocation3 + $0xb0] sm:$0xff] }
  0x68   :  { %2458 = vmatprep.subr.bf16.mxu1 %v2457_v6  ;;  %2490 = vmatprep.subr.bf16.mxu0 %v2489_v7  ;;  %v113_v6 = vld [vmem:[#allocation3 + $0x1a8] sm:$0xff]  ;;  %v663_v7 = vld [vmem:[#allocation8 + $0x50] sm:$0xff] }
  0x69   :  { %2334 = vmatmul.mubr.f32.gmra.mrb[8].mxu0 %v69_v8  ;;  %2382 = vmatmul.mubr.f32.gmra.mrb[8].mxu1 %v101_v10  ;;  %v664_v8 = vld [vmem:[#allocation8 + $0x58] sm:$0xff]  ;;  %v695_v10 = vld [vmem:[#allocation8 + $0x150] sm:$0xff] }
  0x6a   :  { %2336 = vmatprep.mubr.f32.mxu0 %v70_v9  ;;  %2384 = vmatprep.mubr.f32.mxu1 %v102_v11  ;;  %v114_v9 = vld [vmem:[#allocation3 + $0x1b0] sm:$0xff]  ;;  %v696_v11 = vld [vmem:[#allocation8 + $0x158] sm:$0xff]  ;;  %v2471_v19 = vpack.c.bf16 %v664_v8, %v663_v7 }
  0x6d   :  { %2337 = vmatmul.mubr.f32.gmra.mrb[10].mxu0 %v71_v20  ;;  %2385 = vmatmul.mubr.f32.gmra.mrb[10].mxu1 %v103_v21  ;;  %v2503_v20 = vpack.c.bf16 %v696_v11, %v695_v10  ;;  %v116_v21 = vld [vmem:[#allocation3 + $0x1c0] sm:$0xff] }
  0x6e   :  { %2339 = vmatprep.mubr.f32.mxu0 %v72_v22  ;;  %2387 = vmatprep.mubr.f32.mxu1 %v104_v25  ;;  %v2473_v22 = vpack.c.bf16 %v682_v13, %v681_v12  ;;  %v86_v25 = vld [vmem:[#allocation3 + $0xd0] sm:$0xff] }
  0x6f   :  { %2460 = vmatpush3.bf16.xpose.msra.mxu1 %v2459_v23  ;;  %2492 = vmatpush3.bf16.xpose.msra.mxu0 %v2491_v24  ;;  %v2505_v23 = vpack.c.bf16 %v714_v15, %v713_v14  ;;  %v85_v24 = vld [vmem:[#allocation3 + $0xc8] sm:$0xff] }
  0x70   :  { %2462 = vmatprep.subr.bf16.mxu1 %v2461_v26  ;;  %2494 = vmatprep.subr.bf16.mxu0 %v2493_v27  ;;  %v117_v26 = vld [vmem:[#allocation3 + $0x1c8] sm:$0xff]  ;;  %v665_v27 = vld [vmem:[#allocation8 + $0x60] sm:$0xff] }
  0x71   :  { %2340 = vmatmul.mubr.f32.gmra.mrb[12].mxu0 %v73_v28  ;;  %2388 = vmatmul.mubr.f32.gmra.mrb[12].mxu1 %v105_v30  ;;  %v666_v28 = vld [vmem:[#allocation8 + $0x68] sm:$0xff]  ;;  %v697_v30 = vld [vmem:[#allocation8 + $0x160] sm:$0xff] }
  0x72   :  { %2342 = vmatprep.mubr.f32.mxu0 %v74_v29  ;;  %2390 = vmatprep.mubr.f32.mxu1 %v106_v33  ;;  %v118_v29 = vld [vmem:[#allocation3 + $0x1d0] sm:$0xff]  ;;  %v684_v33 = vld [vmem:[#allocation8 + $0xf8] sm:$0xff]  ;;  %v2475_v39 = vpack.c.bf16 %v666_v28, %v665_v27 }
  0x75   :  { %2343 = vmatmul.mubr.f32.gmra.mrb[14].mxu0 %v75_v40  ;;  %2391 = vmatmul.mubr.f32.gmra.mrb[14].mxu1 %v107_v41  ;;  %v2507_v40 = vpack.c.bf16 %v698_v31, %v697_v30  ;;  %v120_v41 = vld [vmem:[#allocation3 + $0x1e0] sm:$0xff] }
  0x76   :  { %2345 = vmatprep.mubr.f32.mxu0 %v76_v42  ;;  %2393 = vmatprep.mubr.f32.mxu1 %v108_v45  ;;  %v2477_v42 = vpack.c.bf16 %v684_v33, %v683_v32  ;;  %v121_v45 = vld [vmem:[#allocation3 + $0x1e8] sm:$0xff] }
  0x77   :  { %2464 = vmatpush3.bf16.xpose.msra.mxu1 %v2463_v43  ;;  %2496 = vmatpush3.bf16.xpose.msra.mxu0 %v2495_v44  ;;  %v2509_v43 = vpack.c.bf16 %v716_v35, %v715_v34  ;;  %v89_v44 = vld [vmem:[#allocation3 + $0xe8] sm:$0xff] }
  0x78   :  { %2466 = vmatprep.subr.bf16.mxu1 %v2465_v46  ;;  %2498 = vmatprep.subr.bf16.mxu0 %v2497_v47  ;;  %v90_v46 = vld [vmem:[#allocation3 + $0xf0] sm:$0xff] }
  0x79   :  { %2346 = vmatmul.mubr.f32.gmra.mrb[16].mxu0 %v77_v48  ;;  %2394 = vmatmul.mubr.f32.gmra.mrb[16].mxu1 %v109_v50  ;;  %v667_v47 = vld [vmem:[#allocation8 + $0x70] sm:$0xff] }
  0x7a   :  { %2348 = vmatprep.mubr.f32.mxu0 %v78_v49  ;;  %2396 = vmatprep.mubr.f32.mxu1 %v110_v53  ;;  %v122_v48 = vld [vmem:[#allocation3 + $0x1f0] sm:$0xff]  ;;  %v668_v49 = vld [vmem:[#allocation8 + $0x78] sm:$0xff] }
  0x7b   :  { %v699_v50 = vld [vmem:[#allocation8 + $0x170] sm:$0xff]  ;;  %v123_v53 = vld [vmem:[#allocation3 + $0x1f8] sm:$0xff]  ;;  %v2479_v54 = vpack.c.bf16 %v668_v49, %v667_v47 }
  0x7c   :  { %v2511_v55 = vpack.c.bf16 %v700_v51, %v699_v50 }
  0x7d   :  { %2349 = vmatmul.mubr.f32.gmra.mrb[18].mxu0 %v79_v60  ;;  %2397 = vmatmul.mubr.f32.gmra.mrb[18].mxu1 %v111_v61 }
  0x7e   :  { %2351 = vmatprep.mubr.f32.mxu0 %v80_v62  ;;  %2399 = vmatprep.mubr.f32.mxu1 %v112_v1 }
  0x7f   :  { %2468 = vmatpush3.bf16.xpose.msra.mxu1 %v2467_v63  ;;  %2500 = vmatpush3.bf16.xpose.msra.mxu0 %v2499_v0 }
  0x80   :  { %2470 = vmatprep.subr.bf16.mxu1 %v2469_v2  ;;  %2502 = vmatprep.subr.bf16.mxu0 %v2501_v3 }
  0x81   :  { %2352 = vmatmul.mubr.f32.gmra.mrb[20].mxu0 %v81_v4  ;;  %2400 = vmatmul.mubr.f32.gmra.mrb[20].mxu1 %v113_v6 }
  0x82   :  { %2354 = vmatprep.mubr.f32.mxu0 %v82_v5  ;;  %2402 = vmatprep.mubr.f32.mxu1 %v114_v9 }
  0x85   :  { %2355 = vmatmul.mubr.f32.gmra.mrb[22].mxu0 %v83_v16  ;;  %2403 = vmatmul.mubr.f32.gmra.mrb[22].mxu1 %v115_v17 }
  0x86   :  { %2357 = vmatprep.mubr.f32.mxu0 %v84_v18  ;;  %2405 = vmatprep.mubr.f32.mxu1 %v116_v21 }
  0x87   :  { %2472 = vmatpush3.bf16.xpose.msra.mxu1 %v2471_v19  ;;  %2504 = vmatpush3.bf16.xpose.msra.mxu0 %v2503_v20 }
  0x88   :  { %2474 = vmatprep.subr.bf16.mxu1 %v2473_v22  ;;  %2506 = vmatprep.subr.bf16.mxu0 %v2505_v23 }
  0x89   :  { %2358 = vmatmul.mubr.f32.gmra.mrb[24].mxu0 %v85_v24  ;;  %2406 = vmatmul.mubr.f32.gmra.mrb[24].mxu1 %v117_v26 }
  0x8a   :  { %2360 = vmatprep.mubr.f32.mxu0 %v86_v25  ;;  %2408 = vmatprep.mubr.f32.mxu1 %v118_v29 }
  0x8d   :  { %2361 = vmatmul.mubr.f32.gmra.mrb[26].mxu0 %v87_v36  ;;  %2409 = vmatmul.mubr.f32.gmra.mrb[26].mxu1 %v119_v37 }
  0x8e   :  { %2363 = vmatprep.mubr.f32.mxu0 %v88_v38  ;;  %2411 = vmatprep.mubr.f32.mxu1 %v120_v41 }
  0x8f   :  { %2476 = vmatpush3.bf16.xpose.msra.mxu1 %v2475_v39  ;;  %2508 = vmatpush3.bf16.xpose.msra.mxu0 %v2507_v40 }
  0x90   :  { %2478 = vmatprep.subr.bf16.mxu1 %v2477_v42  ;;  %2510 = vmatprep.subr.bf16.mxu0 %v2509_v43 }
  0x91   :  { %2364 = vmatmul.mubr.f32.gmra.mrb[28].mxu0 %v89_v44  ;;  %2412 = vmatmul.mubr.f32.gmra.mrb[28].mxu1 %v121_v45 }
  0x92   :  { %2366 = vmatprep.mubr.f32.mxu0 %v90_v46  ;;  %2414 = vmatprep.mubr.f32.mxu1 %v122_v48 }
  0x95   :  { %2367 = vmatmul.mubr.f32.gmra.mrb[30].mxu0 %v91_v52  ;;  %2415 = vmatmul.mubr.f32.gmra.mrb[30].mxu1 %v123_v53 }
  0x97   :  { %2480 = vmatpush3.bf16.xpose.msra.mxu1 %v2479_v54  ;;  %2512 = vmatpush3.bf16.xpose.msra.mxu0 %v2511_v55 }
 0x12c   :  { %v2323_v56 = vpop.f32.mrb[0].mxu0  ;;  %v2711_v57 = vpop.f32.mrb[0].mxu1 }
 0x12d   :  { %v206_v58 = vpop.f32.mrb[1].mxu0  ;;  %v2713_v59 = vpop.f32.mrb[1].mxu1 }
 0x12e   :  { %2001 = vmatprep.mubr.f32.mxu1 %v206_v58  ;;  %2161 = vmatprep.mubr.f32.mxu0 %v206_v58 }
 0x12f   :  { %2002 = vmatmul.mubr.f32.vlgmr.msra.gmra.mrb[32].mxu1 %v206_v58  ;;  %2162 = vmatmul.mubr.f32.vlgmr.msra.gmra.mrb[32].mxu0 %v206_v58 }
 0x130   :  { %2003 = vmatprep.mubr.f32.mxu1 %v2323_v56  ;;  %2163 = vmatprep.mubr.f32.mxu0 %v2323_v56  ;;  %v2326_v60 = vpop.f32.mrb[2].mxu0  ;;  %v2715_v61 = vpop.f32.mrb[2].mxu1 }
 0x131   :  { %v216_v62 = vpop.f32.mrb[3].mxu0  ;;  %v2717_v63 = vpop.f32.mrb[3].mxu1 }
 0x133   :  { %2004 = vmatmul.mubr.f32.gmra.mrb[34].mxu1 %v2323_v56  ;;  %2164 = vmatmul.mubr.f32.gmra.mrb[34].mxu0 %v2323_v56 }
 0x134   :  { %2005 = vmatprep.mubr.f32.mxu1 %v216_v62  ;;  %2165 = vmatprep.mubr.f32.mxu0 %v216_v62  ;;  %v2329_v0 = vpop.f32.mrb[4].mxu0  ;;  %v2719_v3 = vpop.f32.mrb[4].mxu1 }
 0x135   :  { %v226_v1 = vpop.f32.mrb[5].mxu0  ;;  %v2721_v5 = vpop.f32.mrb[5].mxu1 }
 0x137   :  { %2006 = vmatmul.mubr.f32.gmra.mrb[36].mxu1 %v216_v62  ;;  %2166 = vmatmul.mubr.f32.gmra.mrb[36].mxu0 %v216_v62 }
 0x138   :  { %2007 = vmatprep.mubr.f32.mxu1 %v2326_v60  ;;  %2167 = vmatprep.mubr.f32.mxu0 %v2326_v60  ;;  %v2332_v2 = vpop.f32.mrb[6].mxu0  ;;  %v2723_v9 = vpop.f32.mrb[6].mxu1 }
 0x139   :  { %v236_v4 = vpop.f32.mrb[7].mxu0  ;;  %v2725_v11 = vpop.f32.mrb[7].mxu1 }
 0x13b   :  { %2008 = vmatmul.mubr.f32.gmra.mrb[38].mxu1 %v2326_v60  ;;  %2168 = vmatmul.mubr.f32.gmra.mrb[38].mxu0 %v2326_v60 }
 0x13c   :  { %2009 = vmatprep.mubr.f32.mxu1 %v226_v1  ;;  %2169 = vmatprep.mubr.f32.mxu0 %v226_v1  ;;  %v2335_v6 = vpop.f32.mrb[8].mxu0  ;;  %v2729_v15 = vpop.f32.mrb[8].mxu1 }
 0x13d   :  { %v246_v7 = vpop.f32.mrb[9].mxu0  ;;  %v2731_v17 = vpop.f32.mrb[9].mxu1 }
 0x13f   :  { %2010 = vmatmul.mubr.f32.gmra.mrb[40].mxu1 %v226_v1  ;;  %2170 = vmatmul.mubr.f32.gmra.mrb[40].mxu0 %v226_v1 }
 0x140   :  { %2011 = vmatprep.mubr.f32.mxu1 %v2329_v0  ;;  %2171 = vmatprep.mubr.f32.mxu0 %v2329_v0  ;;  %v2338_v8 = vpop.f32.mrb[10].mxu0  ;;  %v2737_v21 = vpop.f32.mrb[10].mxu1 }
 0x141   :  { %v256_v10 = vpop.f32.mrb[11].mxu0  ;;  %v2741_v23 = vpop.f32.mrb[11].mxu1 }
 0x143   :  { %2012 = vmatmul.mubr.f32.gmra.mrb[42].mxu1 %v2329_v0  ;;  %2172 = vmatmul.mubr.f32.gmra.mrb[42].mxu0 %v2329_v0 }
 0x144   :  { %2013 = vmatprep.mubr.f32.mxu1 %v236_v4  ;;  %2173 = vmatprep.mubr.f32.mxu0 %v236_v4  ;;  %v2341_v12 = vpop.f32.mrb[12].mxu0  ;;  %v2749_v27 = vpop.f32.mrb[12].mxu1 }
 0x145   :  { %v266_v13 = vpop.f32.mrb[13].mxu0  ;;  %v2753_v29 = vpop.f32.mrb[13].mxu1 }
 0x147   :  { %2014 = vmatmul.mubr.f32.gmra.mrb[44].mxu1 %v236_v4  ;;  %2174 = vmatmul.mubr.f32.gmra.mrb[44].mxu0 %v236_v4 }
 0x148   :  { %2015 = vmatprep.mubr.f32.mxu1 %v2332_v2  ;;  %2175 = vmatprep.mubr.f32.mxu0 %v2332_v2  ;;  %v2727_v14 = vpop.f32.mrb[14].mxu0  ;;  %v2757_v31 = vpop.f32.mrb[14].mxu1 }
 0x149   :  { %v276_v16 = vpop.f32.mrb[15].mxu0  ;;  %v2761_v33 = vpop.f32.mrb[15].mxu1 }
 0x14b   :  { %2016 = vmatmul.mubr.f32.gmra.mrb[46].mxu1 %v2332_v2  ;;  %2176 = vmatmul.mubr.f32.gmra.mrb[46].mxu0 %v2332_v2 }
 0x14c   :  { %2017 = vmatprep.mubr.f32.mxu1 %v246_v7  ;;  %2177 = vmatprep.mubr.f32.mxu0 %v246_v7  ;;  %v2733_v18 = vpop.f32.mrb[16].mxu0  ;;  %v2765_v35 = vpop.f32.mrb[16].mxu1 }
 0x14d   :  { %v286_v19 = vpop.f32.mrb[17].mxu0  ;;  %v2769_v37 = vpop.f32.mrb[17].mxu1 }
 0x14f   :  { %2018 = vmatmul.mubr.f32.gmra.mrb[48].mxu1 %v246_v7  ;;  %2178 = vmatmul.mubr.f32.gmra.mrb[48].mxu0 %v246_v7 }
 0x150   :  { %2019 = vmatprep.mubr.f32.mxu1 %v2335_v6  ;;  %2179 = vmatprep.mubr.f32.mxu0 %v2335_v6  ;;  %v2735_v20 = vpop.f32.mrb[18].mxu0  ;;  %v2773_v39 = vpop.f32.mrb[18].mxu1 }
 0x151   :  { %v2739_v22 = vpop.f32.mrb[19].mxu0  ;;  %v2777_v41 = vpop.f32.mrb[19].mxu1 }
 0x153   :  { %2020 = vmatmul.mubr.f32.gmra.mrb[50].mxu1 %v2335_v6  ;;  %2180 = vmatmul.mubr.f32.gmra.mrb[50].mxu0 %v2335_v6 }
 0x154   :  { %2021 = vmatprep.mubr.f32.mxu1 %v256_v10  ;;  %2181 = vmatprep.mubr.f32.mxu0 %v256_v10  ;;  %v2743_v24 = vpop.f32.mrb[20].mxu0  ;;  %v2783_v43 = vpop.f32.mrb[20].mxu1 }
 0x155   :  { %v2745_v25 = vpop.f32.mrb[21].mxu0  ;;  %v2787_v45 = vpop.f32.mrb[21].mxu1 }
 0x157   :  { %2022 = vmatmul.mubr.f32.gmra.mrb[52].mxu1 %v256_v10  ;;  %2182 = vmatmul.mubr.f32.gmra.mrb[52].mxu0 %v256_v10 }
 0x158   :  { %2023 = vmatprep.mubr.f32.mxu1 %v2338_v8  ;;  %2183 = vmatprep.mubr.f32.mxu0 %v2338_v8  ;;  %v2747_v26 = vpop.f32.mrb[22].mxu0  ;;  %v2791_v46 = vpop.f32.mrb[22].mxu1 }
 0x159   :  { %v2751_v28 = vpop.f32.mrb[23].mxu0  ;;  %v2793_v47 = vpop.f32.mrb[23].mxu1 }
 0x15b   :  { %2024 = vmatmul.mubr.f32.gmra.mrb[54].mxu1 %v2338_v8  ;;  %2184 = vmatmul.mubr.f32.gmra.mrb[54].mxu0 %v2338_v8 }
 0x15c   :  { %2025 = vmatprep.mubr.f32.mxu1 %v266_v13  ;;  %2185 = vmatprep.mubr.f32.mxu0 %v266_v13  ;;  %v2755_v30 = vpop.f32.mrb[24].mxu0  ;;  %v2797_v48 = vpop.f32.mrb[24].mxu1 }
 0x15d   :  { %v2759_v32 = vpop.f32.mrb[25].mxu0  ;;  %v2799_v49 = vpop.f32.mrb[25].mxu1 }
 0x15f   :  { %2026 = vmatmul.mubr.f32.gmra.mrb[56].mxu1 %v266_v13  ;;  %2186 = vmatmul.mubr.f32.gmra.mrb[56].mxu0 %v266_v13 }
 0x160   :  { %2027 = vmatprep.mubr.f32.mxu1 %v2341_v12  ;;  %2187 = vmatprep.mubr.f32.mxu0 %v2341_v12  ;;  %v2763_v34 = vpop.f32.mrb[26].mxu0  ;;  %v2805_v50 = vpop.f32.mrb[26].mxu1 }
 0x161   :  { %v2767_v36 = vpop.f32.mrb[27].mxu0  ;;  %v2807_v51 = vpop.f32.mrb[27].mxu1 }
 0x163   :  { %2028 = vmatmul.mubr.f32.gmra.mrb[58].mxu1 %v2341_v12  ;;  %2188 = vmatmul.mubr.f32.gmra.mrb[58].mxu0 %v2341_v12 }
 0x164   :  { %2029 = vmatprep.mubr.f32.mxu1 %v276_v16  ;;  %2189 = vmatprep.mubr.f32.mxu0 %v276_v16  ;;  %v2771_v38 = vpop.f32.mrb[28].mxu0  ;;  %v2813_v52 = vpop.f32.mrb[28].mxu1 }
 0x165   :  { %v2775_v40 = vpop.f32.mrb[29].mxu0  ;;  %v2815_v53 = vpop.f32.mrb[29].mxu1 }
 0x167   :  { %2030 = vmatmul.mubr.f32.gmra.mrb[60].mxu1 %v276_v16  ;;  %2190 = vmatmul.mubr.f32.gmra.mrb[60].mxu0 %v276_v16 }
 0x168   :  { %2031 = vmatprep.mubr.f32.mxu1 %v2727_v14  ;;  %2191 = vmatprep.mubr.f32.mxu0 %v2727_v14  ;;  %v2781_v42 = vpop.f32.mrb[30].mxu0  ;;  %v2821_v54 = vpop.f32.mrb[30].mxu1 }
 0x169   :  { %v2785_v44 = vpop.f32.mrb[31].mxu0  ;;  %v2823_v55 = vpop.f32.mrb[31].mxu1 }
 0x16b   :  { %2032 = vmatmul.mubr.f32.gmra.mrb[62].mxu1 %v2727_v14  ;;  %2192 = vmatmul.mubr.f32.gmra.mrb[62].mxu0 %v2727_v14 }
 0x16c   :  { %2033 = vmatprep.mubr.f32.mxu1 %v286_v19  ;;  %2193 = vmatprep.mubr.f32.mxu0 %v286_v19 }
 0x16f   :  { %2034 = vmatmul.mubr.f32.gmra.mrb[64].mxu1 %v286_v19  ;;  %2194 = vmatmul.mubr.f32.gmra.mrb[64].mxu0 %v286_v19 }
 0x170   :  { %2035 = vmatprep.mubr.f32.mxu1 %v2733_v18  ;;  %2195 = vmatprep.mubr.f32.mxu0 %v2733_v18 }
 0x173   :  { %2036 = vmatmul.mubr.f32.gmra.mrb[66].mxu1 %v2733_v18  ;;  %2196 = vmatmul.mubr.f32.gmra.mrb[66].mxu0 %v2733_v18 }
 0x174   :  { %2037 = vmatprep.mubr.f32.mxu1 %v2739_v22  ;;  %2197 = vmatprep.mubr.f32.mxu0 %v2739_v22 }
 0x177   :  { %2038 = vmatmul.mubr.f32.gmra.mrb[68].mxu1 %v2739_v22  ;;  %2198 = vmatmul.mubr.f32.gmra.mrb[68].mxu0 %v2739_v22 }
 0x178   :  { %2039 = vmatprep.mubr.f32.mxu1 %v2735_v20  ;;  %2199 = vmatprep.mubr.f32.mxu0 %v2735_v20 }
 0x17b   :  { %2040 = vmatmul.mubr.f32.gmra.mrb[70].mxu1 %v2735_v20  ;;  %2200 = vmatmul.mubr.f32.gmra.mrb[70].mxu0 %v2735_v20 }
 0x17c   :  { %2041 = vmatprep.mubr.f32.mxu1 %v2745_v25  ;;  %2201 = vmatprep.mubr.f32.mxu0 %v2745_v25 }
 0x17f   :  { %2042 = vmatmul.mubr.f32.gmra.mrb[72].mxu1 %v2745_v25  ;;  %2202 = vmatmul.mubr.f32.gmra.mrb[72].mxu0 %v2745_v25 }
 0x180   :  { %2043 = vmatprep.mubr.f32.mxu1 %v2743_v24  ;;  %2203 = vmatprep.mubr.f32.mxu0 %v2743_v24 }
 0x183   :  { %2044 = vmatmul.mubr.f32.gmra.mrb[74].mxu1 %v2743_v24  ;;  %2204 = vmatmul.mubr.f32.gmra.mrb[74].mxu0 %v2743_v24 }
 0x184   :  { %2045 = vmatprep.mubr.f32.mxu1 %v2751_v28  ;;  %2205 = vmatprep.mubr.f32.mxu0 %v2751_v28 }
 0x187   :  { %2046 = vmatmul.mubr.f32.gmra.mrb[76].mxu1 %v2751_v28  ;;  %2206 = vmatmul.mubr.f32.gmra.mrb[76].mxu0 %v2751_v28 }
 0x188   :  { %2047 = vmatprep.mubr.f32.mxu1 %v2747_v26  ;;  %2207 = vmatprep.mubr.f32.mxu0 %v2747_v26 }
 0x18b   :  { %2048 = vmatmul.mubr.f32.gmra.mrb[78].mxu1 %v2747_v26  ;;  %2208 = vmatmul.mubr.f32.gmra.mrb[78].mxu0 %v2747_v26 }
 0x18c   :  { %2049 = vmatprep.mubr.f32.mxu1 %v2759_v32  ;;  %2209 = vmatprep.mubr.f32.mxu0 %v2759_v32 }
 0x18f   :  { %2050 = vmatmul.mubr.f32.gmra.mrb[80].mxu1 %v2759_v32  ;;  %2210 = vmatmul.mubr.f32.gmra.mrb[80].mxu0 %v2759_v32 }
 0x190   :  { %2051 = vmatprep.mubr.f32.mxu1 %v2755_v30  ;;  %2211 = vmatprep.mubr.f32.mxu0 %v2755_v30 }
 0x193   :  { %2052 = vmatmul.mubr.f32.gmra.mrb[82].mxu1 %v2755_v30  ;;  %2212 = vmatmul.mubr.f32.gmra.mrb[82].mxu0 %v2755_v30 }
 0x194   :  { %2053 = vmatprep.mubr.f32.mxu1 %v2767_v36  ;;  %2213 = vmatprep.mubr.f32.mxu0 %v2767_v36 }
 0x197   :  { %2054 = vmatmul.mubr.f32.gmra.mrb[84].mxu1 %v2767_v36  ;;  %2214 = vmatmul.mubr.f32.gmra.mrb[84].mxu0 %v2767_v36 }
 0x198   :  { %2055 = vmatprep.mubr.f32.mxu1 %v2763_v34  ;;  %2215 = vmatprep.mubr.f32.mxu0 %v2763_v34 }
 0x19b   :  { %2056 = vmatmul.mubr.f32.gmra.mrb[86].mxu1 %v2763_v34  ;;  %2216 = vmatmul.mubr.f32.gmra.mrb[86].mxu0 %v2763_v34 }
 0x19c   :  { %2057 = vmatprep.mubr.f32.mxu1 %v2775_v40  ;;  %2217 = vmatprep.mubr.f32.mxu0 %v2775_v40 }
 0x19f   :  { %2058 = vmatmul.mubr.f32.gmra.mrb[88].mxu1 %v2775_v40  ;;  %2218 = vmatmul.mubr.f32.gmra.mrb[88].mxu0 %v2775_v40 }
 0x1a0   :  { %2059 = vmatprep.mubr.f32.mxu1 %v2771_v38  ;;  %2219 = vmatprep.mubr.f32.mxu0 %v2771_v38 }
 0x1a3   :  { %2060 = vmatmul.mubr.f32.gmra.mrb[90].mxu1 %v2771_v38  ;;  %2220 = vmatmul.mubr.f32.gmra.mrb[90].mxu0 %v2771_v38 }
 0x1a4   :  { %2061 = vmatprep.mubr.f32.mxu1 %v2785_v44  ;;  %2221 = vmatprep.mubr.f32.mxu0 %v2785_v44 }
 0x1a7   :  { %2062 = vmatmul.mubr.f32.gmra.mrb[92].mxu1 %v2785_v44  ;;  %2222 = vmatmul.mubr.f32.gmra.mrb[92].mxu0 %v2785_v44 }
 0x1a8   :  { %2063 = vmatprep.mubr.f32.mxu1 %v2781_v42  ;;  %2223 = vmatprep.mubr.f32.mxu0 %v2781_v42 }
 0x1ab   :  { %2064 = vmatmul.mubr.f32.gmra.mrb[94].mxu1 %v2781_v42  ;;  %2224 = vmatmul.mubr.f32.gmra.mrb[94].mxu0 %v2781_v42 }
 0x1ac   :  { %2065 = vmatprep.mubr.f32.mxu1 %v2713_v59  ;;  %2225 = vmatprep.mubr.f32.mxu0 %v2713_v59 }
 0x1af   :  { %2066 = vmatmul.mubr.f32.gmra.mrb[96].mxu1 %v2713_v59  ;;  %2226 = vmatmul.mubr.f32.gmra.mrb[96].mxu0 %v2713_v59 }
 0x1b0   :  { %2067 = vmatprep.mubr.f32.mxu1 %v2711_v57  ;;  %2227 = vmatprep.mubr.f32.mxu0 %v2711_v57 }
 0x1b3   :  { %2068 = vmatmul.mubr.f32.gmra.mrb[98].mxu1 %v2711_v57  ;;  %2228 = vmatmul.mubr.f32.gmra.mrb[98].mxu0 %v2711_v57 }
 0x1b4   :  { %2069 = vmatprep.mubr.f32.mxu1 %v2717_v63  ;;  %2229 = vmatprep.mubr.f32.mxu0 %v2717_v63 }
 0x1b7   :  { %2070 = vmatmul.mubr.f32.gmra.mrb[100].mxu1 %v2717_v63  ;;  %2230 = vmatmul.mubr.f32.gmra.mrb[100].mxu0 %v2717_v63 }
 0x1b8   :  { %2071 = vmatprep.mubr.f32.mxu1 %v2715_v61  ;;  %2231 = vmatprep.mubr.f32.mxu0 %v2715_v61 }
 0x1bb   :  { %2072 = vmatmul.mubr.f32.gmra.mrb[102].mxu1 %v2715_v61  ;;  %2232 = vmatmul.mubr.f32.gmra.mrb[102].mxu0 %v2715_v61 }
 0x1bc   :  { %2073 = vmatprep.mubr.f32.mxu1 %v2721_v5  ;;  %2233 = vmatprep.mubr.f32.mxu0 %v2721_v5 }
 0x1bf   :  { %2074 = vmatmul.mubr.f32.gmra.mrb[104].mxu1 %v2721_v5  ;;  %2234 = vmatmul.mubr.f32.gmra.mrb[104].mxu0 %v2721_v5 }
 0x1c0   :  { %2075 = vmatprep.mubr.f32.mxu1 %v2719_v3  ;;  %2235 = vmatprep.mubr.f32.mxu0 %v2719_v3 }
 0x1c3   :  { %2076 = vmatmul.mubr.f32.gmra.mrb[106].mxu1 %v2719_v3  ;;  %2236 = vmatmul.mubr.f32.gmra.mrb[106].mxu0 %v2719_v3 }
 0x1c4   :  { %2077 = vmatprep.mubr.f32.mxu1 %v2725_v11  ;;  %2237 = vmatprep.mubr.f32.mxu0 %v2725_v11 }
 0x1c7   :  { %2078 = vmatmul.mubr.f32.gmra.mrb[108].mxu1 %v2725_v11  ;;  %2238 = vmatmul.mubr.f32.gmra.mrb[108].mxu0 %v2725_v11 }
 0x1c8   :  { %2079 = vmatprep.mubr.f32.mxu1 %v2723_v9  ;;  %2239 = vmatprep.mubr.f32.mxu0 %v2723_v9 }
 0x1cb   :  { %2080 = vmatmul.mubr.f32.gmra.mrb[110].mxu1 %v2723_v9  ;;  %2240 = vmatmul.mubr.f32.gmra.mrb[110].mxu0 %v2723_v9 }
 0x1cc   :  { %2081 = vmatprep.mubr.f32.mxu1 %v2731_v17  ;;  %2241 = vmatprep.mubr.f32.mxu0 %v2731_v17 }
 0x1cf   :  { %2082 = vmatmul.mubr.f32.gmra.mrb[112].mxu1 %v2731_v17  ;;  %2242 = vmatmul.mubr.f32.gmra.mrb[112].mxu0 %v2731_v17 }
 0x1d0   :  { %2083 = vmatprep.mubr.f32.mxu1 %v2729_v15  ;;  %2243 = vmatprep.mubr.f32.mxu0 %v2729_v15 }
 0x1d3   :  { %2084 = vmatmul.mubr.f32.gmra.mrb[114].mxu1 %v2729_v15  ;;  %2244 = vmatmul.mubr.f32.gmra.mrb[114].mxu0 %v2729_v15 }
 0x1d4   :  { %2085 = vmatprep.mubr.f32.mxu1 %v2741_v23  ;;  %2245 = vmatprep.mubr.f32.mxu0 %v2741_v23 }
 0x1d7   :  { %2086 = vmatmul.mubr.f32.gmra.mrb[116].mxu1 %v2741_v23  ;;  %2246 = vmatmul.mubr.f32.gmra.mrb[116].mxu0 %v2741_v23 }
 0x1d8   :  { %2087 = vmatprep.mubr.f32.mxu1 %v2737_v21  ;;  %2247 = vmatprep.mubr.f32.mxu0 %v2737_v21 }
 0x1db   :  { %2088 = vmatmul.mubr.f32.gmra.mrb[118].mxu1 %v2737_v21  ;;  %2248 = vmatmul.mubr.f32.gmra.mrb[118].mxu0 %v2737_v21 }
 0x1dc   :  { %2089 = vmatprep.mubr.f32.mxu1 %v2753_v29  ;;  %2249 = vmatprep.mubr.f32.mxu0 %v2753_v29 }
 0x1df   :  { %2090 = vmatmul.mubr.f32.gmra.mrb[120].mxu1 %v2753_v29  ;;  %2250 = vmatmul.mubr.f32.gmra.mrb[120].mxu0 %v2753_v29 }
 0x1e0   :  { %2091 = vmatprep.mubr.f32.mxu1 %v2749_v27  ;;  %2251 = vmatprep.mubr.f32.mxu0 %v2749_v27 }
 0x1e3   :  { %2092 = vmatmul.mubr.f32.gmra.mrb[122].mxu1 %v2749_v27  ;;  %2252 = vmatmul.mubr.f32.gmra.mrb[122].mxu0 %v2749_v27 }
 0x1e4   :  { %2093 = vmatprep.mubr.f32.mxu1 %v2761_v33  ;;  %2253 = vmatprep.mubr.f32.mxu0 %v2761_v33 }
 0x1e7   :  { %2094 = vmatmul.mubr.f32.gmra.mrb[124].mxu1 %v2761_v33  ;;  %2254 = vmatmul.mubr.f32.gmra.mrb[124].mxu0 %v2761_v33 }
 0x1e8   :  { %2095 = vmatprep.mubr.f32.mxu1 %v2757_v31  ;;  %2255 = vmatprep.mubr.f32.mxu0 %v2757_v31 }
 0x1eb   :  { %2096 = vmatmul.mubr.f32.gmra.mrb[126].mxu1 %v2757_v31  ;;  %2256 = vmatmul.mubr.f32.gmra.mrb[126].mxu0 %v2757_v31 }
 0x1ec   :  { %2097 = vmatprep.mubr.f32.mxu1 %v2769_v37  ;;  %2257 = vmatprep.mubr.f32.mxu0 %v2769_v37 }
 0x1ef   :  { %2098 = vmatmul.mubr.f32.gmra.mrb[128].mxu1 %v2769_v37  ;;  %2258 = vmatmul.mubr.f32.gmra.mrb[128].mxu0 %v2769_v37 }
 0x1f0   :  { %2099 = vmatprep.mubr.f32.mxu1 %v2765_v35  ;;  %2259 = vmatprep.mubr.f32.mxu0 %v2765_v35 }
 0x1f3   :  { %2100 = vmatmul.mubr.f32.gmra.mrb[130].mxu1 %v2765_v35  ;;  %2260 = vmatmul.mubr.f32.gmra.mrb[130].mxu0 %v2765_v35 }
 0x1f4   :  { %2101 = vmatprep.mubr.f32.mxu1 %v2777_v41  ;;  %2261 = vmatprep.mubr.f32.mxu0 %v2777_v41 }
 0x1f7   :  { %2102 = vmatmul.mubr.f32.gmra.mrb[132].mxu1 %v2777_v41  ;;  %2262 = vmatmul.mubr.f32.gmra.mrb[132].mxu0 %v2777_v41 }
 0x1f8   :  { %2103 = vmatprep.mubr.f32.mxu1 %v2773_v39  ;;  %2263 = vmatprep.mubr.f32.mxu0 %v2773_v39 }
 0x1fb   :  { %2104 = vmatmul.mubr.f32.gmra.mrb[134].mxu1 %v2773_v39  ;;  %2264 = vmatmul.mubr.f32.gmra.mrb[134].mxu0 %v2773_v39 }
 0x1fc   :  { %2105 = vmatprep.mubr.f32.mxu1 %v2787_v45  ;;  %2265 = vmatprep.mubr.f32.mxu0 %v2787_v45 }
 0x1ff   :  { %2106 = vmatmul.mubr.f32.gmra.mrb[136].mxu1 %v2787_v45  ;;  %2266 = vmatmul.mubr.f32.gmra.mrb[136].mxu0 %v2787_v45 }
 0x200   :  { %2107 = vmatprep.mubr.f32.mxu1 %v2783_v43  ;;  %2267 = vmatprep.mubr.f32.mxu0 %v2783_v43 }
 0x202   :  { %v783_v56 = vpop.f32.mrb[32].mxu1  ;;  %v1232_v57 = vpop.f32.mrb[32].mxu0 }
 0x203   :  { %1615 = vst [vmem:[#allocation9] sm:$0xff] %v783_v56  ;;  %1617 = vst [vmem:[#allocation9 + $0x10] sm:$0xff] %v1232_v57  ;;  %v785_v58 = vpop.f32.mrb[33].mxu1  ;;  %2108 = vmatmul.mubr.f32.gmra.mrb[138].mxu1 %v2783_v43  ;;  %v1234_v59 = vpop.f32.mrb[33].mxu0  ;;  %2268 = vmatmul.mubr.f32.gmra.mrb[138].mxu0 %v2783_v43 }
 0x204   :  { %1616 = vst [vmem:[#allocation9 + $0x8] sm:$0xff] %v785_v58  ;;  %1618 = vst [vmem:[#allocation9 + $0x18] sm:$0xff] %v1234_v59  ;;  %2109 = vmatprep.mubr.f32.mxu1 %v2793_v47  ;;  %2269 = vmatprep.mubr.f32.mxu0 %v2793_v47 }
 0x206   :  { %v789_v60 = vpop.f32.mrb[34].mxu1  ;;  %v1238_v61 = vpop.f32.mrb[34].mxu0 }
 0x207   :  { %1619 = vst [vmem:[#allocation9 + $0x20] sm:$0xff] %v789_v60  ;;  %1621 = vst [vmem:[#allocation9 + $0x30] sm:$0xff] %v1238_v61  ;;  %v791_v62 = vpop.f32.mrb[35].mxu1  ;;  %2110 = vmatmul.mubr.f32.gmra.mrb[140].mxu1 %v2793_v47  ;;  %v1240_v63 = vpop.f32.mrb[35].mxu0  ;;  %2270 = vmatmul.mubr.f32.gmra.mrb[140].mxu0 %v2793_v47 }
 0x208   :  { %1620 = vst [vmem:[#allocation9 + $0x28] sm:$0xff] %v791_v62  ;;  %1622 = vst [vmem:[#allocation9 + $0x38] sm:$0xff] %v1240_v63  ;;  %2111 = vmatprep.mubr.f32.mxu1 %v2791_v46  ;;  %2271 = vmatprep.mubr.f32.mxu0 %v2791_v46 }
 0x20a   :  { %v795_v0 = vpop.f32.mrb[36].mxu1  ;;  %v1244_v1 = vpop.f32.mrb[36].mxu0 }
 0x20b   :  { %1623 = vst [vmem:[#allocation9 + $0x40] sm:$0xff] %v795_v0  ;;  %1625 = vst [vmem:[#allocation9 + $0x50] sm:$0xff] %v1244_v1  ;;  %v797_v2 = vpop.f32.mrb[37].mxu1  ;;  %2112 = vmatmul.mubr.f32.gmra.mrb[142].mxu1 %v2791_v46  ;;  %v1246_v3 = vpop.f32.mrb[37].mxu0  ;;  %2272 = vmatmul.mubr.f32.gmra.mrb[142].mxu0 %v2791_v46 }
 0x20c   :  { %1624 = vst [vmem:[#allocation9 + $0x48] sm:$0xff] %v797_v2  ;;  %1626 = vst [vmem:[#allocation9 + $0x58] sm:$0xff] %v1246_v3  ;;  %2113 = vmatprep.mubr.f32.mxu1 %v2799_v49  ;;  %2273 = vmatprep.mubr.f32.mxu0 %v2799_v49 }
 0x20e   :  { %v801_v4 = vpop.f32.mrb[38].mxu1  ;;  %v1250_v5 = vpop.f32.mrb[38].mxu0 }
 0x20f   :  { %1627 = vst [vmem:[#allocation9 + $0x60] sm:$0xff] %v801_v4  ;;  %1629 = vst [vmem:[#allocation9 + $0x70] sm:$0xff] %v1250_v5  ;;  %v803_v6 = vpop.f32.mrb[39].mxu1  ;;  %2114 = vmatmul.mubr.f32.gmra.mrb[144].mxu1 %v2799_v49  ;;  %v1252_v7 = vpop.f32.mrb[39].mxu0  ;;  %2274 = vmatmul.mubr.f32.gmra.mrb[144].mxu0 %v2799_v49 }
 0x210   :  { %1628 = vst [vmem:[#allocation9 + $0x68] sm:$0xff] %v803_v6  ;;  %1630 = vst [vmem:[#allocation9 + $0x78] sm:$0xff] %v1252_v7  ;;  %2115 = vmatprep.mubr.f32.mxu1 %v2797_v48  ;;  %2275 = vmatprep.mubr.f32.mxu0 %v2797_v48 }
 0x212   :  { %v807_v8 = vpop.f32.mrb[40].mxu1  ;;  %v1256_v9 = vpop.f32.mrb[40].mxu0 }
 0x213   :  { %1631 = vst [vmem:[#allocation9 + $0x80] sm:$0xff] %v807_v8  ;;  %1633 = vst [vmem:[#allocation9 + $0x90] sm:$0xff] %v1256_v9  ;;  %v809_v10 = vpop.f32.mrb[41].mxu1  ;;  %2116 = vmatmul.mubr.f32.gmra.mrb[146].mxu1 %v2797_v48  ;;  %v1258_v11 = vpop.f32.mrb[41].mxu0  ;;  %2276 = vmatmul.mubr.f32.gmra.mrb[146].mxu0 %v2797_v48 }
 0x214   :  { %1632 = vst [vmem:[#allocation9 + $0x88] sm:$0xff] %v809_v10  ;;  %1634 = vst [vmem:[#allocation9 + $0x98] sm:$0xff] %v1258_v11  ;;  %2117 = vmatprep.mubr.f32.mxu1 %v2807_v51  ;;  %2277 = vmatprep.mubr.f32.mxu0 %v2807_v51 }
 0x216   :  { %v813_v12 = vpop.f32.mrb[42].mxu1  ;;  %v1262_v13 = vpop.f32.mrb[42].mxu0 }
 0x217   :  { %1635 = vst [vmem:[#allocation9 + $0xa0] sm:$0xff] %v813_v12  ;;  %1637 = vst [vmem:[#allocation9 + $0xb0] sm:$0xff] %v1262_v13  ;;  %v815_v14 = vpop.f32.mrb[43].mxu1  ;;  %2118 = vmatmul.mubr.f32.gmra.mrb[148].mxu1 %v2807_v51  ;;  %v1264_v15 = vpop.f32.mrb[43].mxu0  ;;  %2278 = vmatmul.mubr.f32.gmra.mrb[148].mxu0 %v2807_v51 }
 0x218   :  { %1636 = vst [vmem:[#allocation9 + $0xa8] sm:$0xff] %v815_v14  ;;  %1638 = vst [vmem:[#allocation9 + $0xb8] sm:$0xff] %v1264_v15  ;;  %2119 = vmatprep.mubr.f32.mxu1 %v2805_v50  ;;  %2279 = vmatprep.mubr.f32.mxu0 %v2805_v50 }
 0x21a   :  { %v819_v16 = vpop.f32.mrb[44].mxu1  ;;  %v1268_v17 = vpop.f32.mrb[44].mxu0 }
 0x21b   :  { %1639 = vst [vmem:[#allocation9 + $0xc0] sm:$0xff] %v819_v16  ;;  %1641 = vst [vmem:[#allocation9 + $0xd0] sm:$0xff] %v1268_v17  ;;  %v821_v18 = vpop.f32.mrb[45].mxu1  ;;  %2120 = vmatmul.mubr.f32.gmra.mrb[150].mxu1 %v2805_v50  ;;  %v1270_v19 = vpop.f32.mrb[45].mxu0  ;;  %2280 = vmatmul.mubr.f32.gmra.mrb[150].mxu0 %v2805_v50 }
 0x21c   :  { %1640 = vst [vmem:[#allocation9 + $0xc8] sm:$0xff] %v821_v18  ;;  %1642 = vst [vmem:[#allocation9 + $0xd8] sm:$0xff] %v1270_v19  ;;  %2121 = vmatprep.mubr.f32.mxu1 %v2815_v53  ;;  %2281 = vmatprep.mubr.f32.mxu0 %v2815_v53 }
 0x21e   :  { %v825_v20 = vpop.f32.mrb[46].mxu1  ;;  %v1274_v21 = vpop.f32.mrb[46].mxu0 }
 0x21f   :  { %1643 = vst [vmem:[#allocation9 + $0xe0] sm:$0xff] %v825_v20  ;;  %1645 = vst [vmem:[#allocation9 + $0xf0] sm:$0xff] %v1274_v21  ;;  %v827_v22 = vpop.f32.mrb[47].mxu1  ;;  %2122 = vmatmul.mubr.f32.gmra.mrb[152].mxu1 %v2815_v53  ;;  %v1276_v23 = vpop.f32.mrb[47].mxu0  ;;  %2282 = vmatmul.mubr.f32.gmra.mrb[152].mxu0 %v2815_v53 }
 0x220   :  { %1644 = vst [vmem:[#allocation9 + $0xe8] sm:$0xff] %v827_v22  ;;  %1646 = vst [vmem:[#allocation9 + $0xf8] sm:$0xff] %v1276_v23  ;;  %2123 = vmatprep.mubr.f32.mxu1 %v2813_v52  ;;  %2283 = vmatprep.mubr.f32.mxu0 %v2813_v52 }
 0x222   :  { %v831_v24 = vpop.f32.mrb[48].mxu1  ;;  %v1280_v25 = vpop.f32.mrb[48].mxu0 }
 0x223   :  { %1647 = vst [vmem:[#allocation9 + $0x100] sm:$0xff] %v831_v24  ;;  %1649 = vst [vmem:[#allocation9 + $0x110] sm:$0xff] %v1280_v25  ;;  %v833_v26 = vpop.f32.mrb[49].mxu1  ;;  %2124 = vmatmul.mubr.f32.gmra.mrb[154].mxu1 %v2813_v52  ;;  %v1282_v27 = vpop.f32.mrb[49].mxu0  ;;  %2284 = vmatmul.mubr.f32.gmra.mrb[154].mxu0 %v2813_v52 }
 0x224   :  { %1648 = vst [vmem:[#allocation9 + $0x108] sm:$0xff] %v833_v26  ;;  %1650 = vst [vmem:[#allocation9 + $0x118] sm:$0xff] %v1282_v27  ;;  %2125 = vmatprep.mubr.f32.mxu1 %v2823_v55  ;;  %2285 = vmatprep.mubr.f32.mxu0 %v2823_v55 }
 0x226   :  { %v837_v28 = vpop.f32.mrb[50].mxu1  ;;  %v1286_v29 = vpop.f32.mrb[50].mxu0 }
 0x227   :  { %1651 = vst [vmem:[#allocation9 + $0x120] sm:$0xff] %v837_v28  ;;  %1653 = vst [vmem:[#allocation9 + $0x130] sm:$0xff] %v1286_v29  ;;  %v839_v30 = vpop.f32.mrb[51].mxu1  ;;  %2126 = vmatmul.mubr.f32.gmra.mrb[156].mxu1 %v2823_v55  ;;  %v1288_v31 = vpop.f32.mrb[51].mxu0  ;;  %2286 = vmatmul.mubr.f32.gmra.mrb[156].mxu0 %v2823_v55 }
 0x228   :  { %1652 = vst [vmem:[#allocation9 + $0x128] sm:$0xff] %v839_v30  ;;  %1654 = vst [vmem:[#allocation9 + $0x138] sm:$0xff] %v1288_v31  ;;  %2127 = vmatprep.mubr.f32.mxu1 %v2821_v54  ;;  %2287 = vmatprep.mubr.f32.mxu0 %v2821_v54 }
 0x22a   :  { %v843_v32 = vpop.f32.mrb[52].mxu1  ;;  %v1292_v33 = vpop.f32.mrb[52].mxu0 }
 0x22b   :  { %1655 = vst [vmem:[#allocation9 + $0x140] sm:$0xff] %v843_v32  ;;  %1657 = vst [vmem:[#allocation9 + $0x150] sm:$0xff] %v1292_v33  ;;  %v845_v34 = vpop.f32.mrb[53].mxu1  ;;  %2128 = vmatmul.mubr.f32.gmra.mrb[158].mxu1 %v2821_v54  ;;  %v1294_v35 = vpop.f32.mrb[53].mxu0  ;;  %2288 = vmatmul.mubr.f32.gmra.mrb[158].mxu0 %v2821_v54 }
 0x22c   :  { %1656 = vst [vmem:[#allocation9 + $0x148] sm:$0xff] %v845_v34  ;;  %1658 = vst [vmem:[#allocation9 + $0x158] sm:$0xff] %v1294_v35 }
 0x22e   :  { %v849_v36 = vpop.f32.mrb[54].mxu1  ;;  %v1298_v37 = vpop.f32.mrb[54].mxu0 }
 0x22f   :  { %1659 = vst [vmem:[#allocation9 + $0x160] sm:$0xff] %v849_v36  ;;  %1661 = vst [vmem:[#allocation9 + $0x170] sm:$0xff] %v1298_v37  ;;  %v851_v38 = vpop.f32.mrb[55].mxu1  ;;  %v1300_v39 = vpop.f32.mrb[55].mxu0 }
 0x230   :  { %1660 = vst [vmem:[#allocation9 + $0x168] sm:$0xff] %v851_v38  ;;  %1662 = vst [vmem:[#allocation9 + $0x178] sm:$0xff] %v1300_v39 }
 0x232   :  { %v855_v40 = vpop.f32.mrb[56].mxu1  ;;  %v1304_v41 = vpop.f32.mrb[56].mxu0 }
 0x233   :  { %1663 = vst [vmem:[#allocation9 + $0x180] sm:$0xff] %v855_v40  ;;  %1665 = vst [vmem:[#allocation9 + $0x190] sm:$0xff] %v1304_v41  ;;  %v857_v42 = vpop.f32.mrb[57].mxu1  ;;  %v1306_v43 = vpop.f32.mrb[57].mxu0 }
 0x234   :  { %1664 = vst [vmem:[#allocation9 + $0x188] sm:$0xff] %v857_v42  ;;  %1666 = vst [vmem:[#allocation9 + $0x198] sm:$0xff] %v1306_v43 }
 0x236   :  { %v861_v44 = vpop.f32.mrb[58].mxu1  ;;  %v1310_v45 = vpop.f32.mrb[58].mxu0 }
 0x237   :  { %1667 = vst [vmem:[#allocation9 + $0x1a0] sm:$0xff] %v861_v44  ;;  %1669 = vst [vmem:[#allocation9 + $0x1b0] sm:$0xff] %v1310_v45  ;;  %v863_v46 = vpop.f32.mrb[59].mxu1  ;;  %v1312_v47 = vpop.f32.mrb[59].mxu0 }
 0x238   :  { %1668 = vst [vmem:[#allocation9 + $0x1a8] sm:$0xff] %v863_v46  ;;  %1670 = vst [vmem:[#allocation9 + $0x1b8] sm:$0xff] %v1312_v47 }
 0x23a   :  { %v867_v48 = vpop.f32.mrb[60].mxu1  ;;  %v1316_v49 = vpop.f32.mrb[60].mxu0 }
 0x23b   :  { %1671 = vst [vmem:[#allocation9 + $0x1c0] sm:$0xff] %v867_v48  ;;  %1673 = vst [vmem:[#allocation9 + $0x1d0] sm:$0xff] %v1316_v49  ;;  %v869_v50 = vpop.f32.mrb[61].mxu1  ;;  %v1318_v51 = vpop.f32.mrb[61].mxu0 }
 0x23c   :  { %1672 = vst [vmem:[#allocation9 + $0x1c8] sm:$0xff] %v869_v50  ;;  %1674 = vst [vmem:[#allocation9 + $0x1d8] sm:$0xff] %v1318_v51 }
 0x23e   :  { %v873_v52 = vpop.f32.mrb[62].mxu1  ;;  %v1322_v53 = vpop.f32.mrb[62].mxu0 }
 0x23f   :  { %1675 = vst [vmem:[#allocation9 + $0x1e0] sm:$0xff] %v873_v52  ;;  %1677 = vst [vmem:[#allocation9 + $0x1f0] sm:$0xff] %v1322_v53  ;;  %v875_v54 = vpop.f32.mrb[63].mxu1  ;;  %v1324_v55 = vpop.f32.mrb[63].mxu0 }
 0x240   :  { %1676 = vst [vmem:[#allocation9 + $0x1e8] sm:$0xff] %v875_v54  ;;  %1678 = vst [vmem:[#allocation9 + $0x1f8] sm:$0xff] %v1324_v55 }
 0x242   :  { %v879_v56 = vpop.f32.mrb[64].mxu1  ;;  %v1328_v57 = vpop.f32.mrb[64].mxu0 }
 0x243   :  { %1679 = vst [vmem:[#allocation9 + $0x200] sm:$0xff] %v879_v56  ;;  %1681 = vst [vmem:[#allocation9 + $0x210] sm:$0xff] %v1328_v57  ;;  %v881_v58 = vpop.f32.mrb[65].mxu1  ;;  %v1330_v59 = vpop.f32.mrb[65].mxu0 }
 0x244   :  { %1680 = vst [vmem:[#allocation9 + $0x208] sm:$0xff] %v881_v58  ;;  %1682 = vst [vmem:[#allocation9 + $0x218] sm:$0xff] %v1330_v59 }
 0x246   :  { %v885_v60 = vpop.f32.mrb[66].mxu1  ;;  %v1334_v61 = vpop.f32.mrb[66].mxu0 }
 0x247   :  { %1683 = vst [vmem:[#allocation9 + $0x220] sm:$0xff] %v885_v60  ;;  %1685 = vst [vmem:[#allocation9 + $0x230] sm:$0xff] %v1334_v61  ;;  %v887_v62 = vpop.f32.mrb[67].mxu1  ;;  %v1336_v63 = vpop.f32.mrb[67].mxu0 }
 0x248   :  { %1684 = vst [vmem:[#allocation9 + $0x228] sm:$0xff] %v887_v62  ;;  %1686 = vst [vmem:[#allocation9 + $0x238] sm:$0xff] %v1336_v63 }
 0x24a   :  { %v891_v0 = vpop.f32.mrb[68].mxu1  ;;  %v1340_v1 = vpop.f32.mrb[68].mxu0 }
 0x24b   :  { %1687 = vst [vmem:[#allocation9 + $0x240] sm:$0xff] %v891_v0  ;;  %1689 = vst [vmem:[#allocation9 + $0x250] sm:$0xff] %v1340_v1  ;;  %v893_v2 = vpop.f32.mrb[69].mxu1  ;;  %v1342_v3 = vpop.f32.mrb[69].mxu0 }
 0x24c   :  { %1688 = vst [vmem:[#allocation9 + $0x248] sm:$0xff] %v893_v2  ;;  %1690 = vst [vmem:[#allocation9 + $0x258] sm:$0xff] %v1342_v3 }
 0x24e   :  { %v897_v4 = vpop.f32.mrb[70].mxu1  ;;  %v1346_v5 = vpop.f32.mrb[70].mxu0 }
 0x24f   :  { %1691 = vst [vmem:[#allocation9 + $0x260] sm:$0xff] %v897_v4  ;;  %1693 = vst [vmem:[#allocation9 + $0x270] sm:$0xff] %v1346_v5  ;;  %v899_v6 = vpop.f32.mrb[71].mxu1  ;;  %v1348_v7 = vpop.f32.mrb[71].mxu0 }
 0x250   :  { %1692 = vst [vmem:[#allocation9 + $0x268] sm:$0xff] %v899_v6  ;;  %1694 = vst [vmem:[#allocation9 + $0x278] sm:$0xff] %v1348_v7 }
 0x252   :  { %v903_v8 = vpop.f32.mrb[72].mxu1  ;;  %v1352_v9 = vpop.f32.mrb[72].mxu0 }
 0x253   :  { %1695 = vst [vmem:[#allocation9 + $0x280] sm:$0xff] %v903_v8  ;;  %1697 = vst [vmem:[#allocation9 + $0x290] sm:$0xff] %v1352_v9  ;;  %v905_v10 = vpop.f32.mrb[73].mxu1  ;;  %v1354_v11 = vpop.f32.mrb[73].mxu0 }
 0x254   :  { %1696 = vst [vmem:[#allocation9 + $0x288] sm:$0xff] %v905_v10  ;;  %1698 = vst [vmem:[#allocation9 + $0x298] sm:$0xff] %v1354_v11 }
 0x256   :  { %v909_v12 = vpop.f32.mrb[74].mxu1  ;;  %v1358_v13 = vpop.f32.mrb[74].mxu0 }
 0x257   :  { %1699 = vst [vmem:[#allocation9 + $0x2a0] sm:$0xff] %v909_v12  ;;  %1701 = vst [vmem:[#allocation9 + $0x2b0] sm:$0xff] %v1358_v13  ;;  %v911_v14 = vpop.f32.mrb[75].mxu1  ;;  %v1360_v15 = vpop.f32.mrb[75].mxu0 }
 0x258   :  { %1700 = vst [vmem:[#allocation9 + $0x2a8] sm:$0xff] %v911_v14  ;;  %1702 = vst [vmem:[#allocation9 + $0x2b8] sm:$0xff] %v1360_v15 }
 0x25a   :  { %v915_v16 = vpop.f32.mrb[76].mxu1  ;;  %v1364_v17 = vpop.f32.mrb[76].mxu0 }
 0x25b   :  { %1703 = vst [vmem:[#allocation9 + $0x2c0] sm:$0xff] %v915_v16  ;;  %1705 = vst [vmem:[#allocation9 + $0x2d0] sm:$0xff] %v1364_v17  ;;  %v917_v18 = vpop.f32.mrb[77].mxu1  ;;  %v1366_v19 = vpop.f32.mrb[77].mxu0 }
 0x25c   :  { %1704 = vst [vmem:[#allocation9 + $0x2c8] sm:$0xff] %v917_v18  ;;  %1706 = vst [vmem:[#allocation9 + $0x2d8] sm:$0xff] %v1366_v19 }
 0x25e   :  { %v921_v20 = vpop.f32.mrb[78].mxu1  ;;  %v1370_v21 = vpop.f32.mrb[78].mxu0 }
 0x25f   :  { %1707 = vst [vmem:[#allocation9 + $0x2e0] sm:$0xff] %v921_v20  ;;  %1709 = vst [vmem:[#allocation9 + $0x2f0] sm:$0xff] %v1370_v21  ;;  %v923_v22 = vpop.f32.mrb[79].mxu1  ;;  %v1372_v23 = vpop.f32.mrb[79].mxu0 }
 0x260   :  { %1708 = vst [vmem:[#allocation9 + $0x2e8] sm:$0xff] %v923_v22  ;;  %1710 = vst [vmem:[#allocation9 + $0x2f8] sm:$0xff] %v1372_v23 }
 0x262   :  { %v927_v24 = vpop.f32.mrb[80].mxu1  ;;  %v1376_v25 = vpop.f32.mrb[80].mxu0 }
 0x263   :  { %1711 = vst [vmem:[#allocation9 + $0x300] sm:$0xff] %v927_v24  ;;  %1713 = vst [vmem:[#allocation9 + $0x310] sm:$0xff] %v1376_v25  ;;  %v929_v26 = vpop.f32.mrb[81].mxu1  ;;  %v1378_v27 = vpop.f32.mrb[81].mxu0 }
 0x264   :  { %1712 = vst [vmem:[#allocation9 + $0x308] sm:$0xff] %v929_v26  ;;  %1714 = vst [vmem:[#allocation9 + $0x318] sm:$0xff] %v1378_v27 }
 0x266   :  { %v933_v28 = vpop.f32.mrb[82].mxu1  ;;  %v1382_v29 = vpop.f32.mrb[82].mxu0 }
 0x267   :  { %1715 = vst [vmem:[#allocation9 + $0x320] sm:$0xff] %v933_v28  ;;  %1717 = vst [vmem:[#allocation9 + $0x330] sm:$0xff] %v1382_v29  ;;  %v935_v30 = vpop.f32.mrb[83].mxu1  ;;  %v1384_v31 = vpop.f32.mrb[83].mxu0 }
 0x268   :  { %1716 = vst [vmem:[#allocation9 + $0x328] sm:$0xff] %v935_v30  ;;  %1718 = vst [vmem:[#allocation9 + $0x338] sm:$0xff] %v1384_v31 }
 0x26a   :  { %v939_v32 = vpop.f32.mrb[84].mxu1  ;;  %v1388_v33 = vpop.f32.mrb[84].mxu0 }
 0x26b   :  { %1719 = vst [vmem:[#allocation9 + $0x340] sm:$0xff] %v939_v32  ;;  %1721 = vst [vmem:[#allocation9 + $0x350] sm:$0xff] %v1388_v33  ;;  %v941_v34 = vpop.f32.mrb[85].mxu1  ;;  %v1390_v35 = vpop.f32.mrb[85].mxu0 }
 0x26c   :  { %1720 = vst [vmem:[#allocation9 + $0x348] sm:$0xff] %v941_v34  ;;  %1722 = vst [vmem:[#allocation9 + $0x358] sm:$0xff] %v1390_v35 }
 0x26e   :  { %v945_v36 = vpop.f32.mrb[86].mxu1  ;;  %v1394_v37 = vpop.f32.mrb[86].mxu0 }
 0x26f   :  { %1723 = vst [vmem:[#allocation9 + $0x360] sm:$0xff] %v945_v36  ;;  %1725 = vst [vmem:[#allocation9 + $0x370] sm:$0xff] %v1394_v37  ;;  %v947_v38 = vpop.f32.mrb[87].mxu1  ;;  %v1396_v39 = vpop.f32.mrb[87].mxu0 }
 0x270   :  { %1724 = vst [vmem:[#allocation9 + $0x368] sm:$0xff] %v947_v38  ;;  %1726 = vst [vmem:[#allocation9 + $0x378] sm:$0xff] %v1396_v39 }
 0x272   :  { %v951_v40 = vpop.f32.mrb[88].mxu1  ;;  %v1400_v41 = vpop.f32.mrb[88].mxu0 }
 0x273   :  { %1727 = vst [vmem:[#allocation9 + $0x380] sm:$0xff] %v951_v40  ;;  %1729 = vst [vmem:[#allocation9 + $0x390] sm:$0xff] %v1400_v41  ;;  %v953_v42 = vpop.f32.mrb[89].mxu1  ;;  %v1402_v43 = vpop.f32.mrb[89].mxu0 }
 0x274   :  { %1728 = vst [vmem:[#allocation9 + $0x388] sm:$0xff] %v953_v42  ;;  %1730 = vst [vmem:[#allocation9 + $0x398] sm:$0xff] %v1402_v43 }
 0x276   :  { %v957_v44 = vpop.f32.mrb[90].mxu1  ;;  %v1406_v45 = vpop.f32.mrb[90].mxu0 }
 0x277   :  { %1731 = vst [vmem:[#allocation9 + $0x3a0] sm:$0xff] %v957_v44  ;;  %1733 = vst [vmem:[#allocation9 + $0x3b0] sm:$0xff] %v1406_v45  ;;  %v959_v46 = vpop.f32.mrb[91].mxu1  ;;  %v1408_v47 = vpop.f32.mrb[91].mxu0 }
 0x278   :  { %1732 = vst [vmem:[#allocation9 + $0x3a8] sm:$0xff] %v959_v46  ;;  %1734 = vst [vmem:[#allocation9 + $0x3b8] sm:$0xff] %v1408_v47 }
 0x27a   :  { %v963_v48 = vpop.f32.mrb[92].mxu1  ;;  %v1412_v49 = vpop.f32.mrb[92].mxu0 }
 0x27b   :  { %1735 = vst [vmem:[#allocation9 + $0x3c0] sm:$0xff] %v963_v48  ;;  %1737 = vst [vmem:[#allocation9 + $0x3d0] sm:$0xff] %v1412_v49  ;;  %v965_v50 = vpop.f32.mrb[93].mxu1  ;;  %v1414_v51 = vpop.f32.mrb[93].mxu0 }
 0x27c   :  { %1736 = vst [vmem:[#allocation9 + $0x3c8] sm:$0xff] %v965_v50  ;;  %1738 = vst [vmem:[#allocation9 + $0x3d8] sm:$0xff] %v1414_v51 }
 0x27e   :  { %v969_v52 = vpop.f32.mrb[94].mxu1  ;;  %v1418_v53 = vpop.f32.mrb[94].mxu0 }
 0x27f   :  { %1739 = vst [vmem:[#allocation9 + $0x3e0] sm:$0xff] %v969_v52  ;;  %1741 = vst [vmem:[#allocation9 + $0x3f0] sm:$0xff] %v1418_v53  ;;  %v971_v54 = vpop.f32.mrb[95].mxu1  ;;  %v1420_v55 = vpop.f32.mrb[95].mxu0 }
 0x280   :  { %1740 = vst [vmem:[#allocation9 + $0x3e8] sm:$0xff] %v971_v54  ;;  %1742 = vst [vmem:[#allocation9 + $0x3f8] sm:$0xff] %v1420_v55 }
 0x282   :  { %v975_v56 = vpop.f32.mrb[96].mxu1  ;;  %v1424_v57 = vpop.f32.mrb[96].mxu0 }
 0x283   :  { %1743 = vst [vmem:[#allocation9 + $0x400] sm:$0xff] %v975_v56  ;;  %1745 = vst [vmem:[#allocation9 + $0x410] sm:$0xff] %v1424_v57  ;;  %v977_v58 = vpop.f32.mrb[97].mxu1  ;;  %v1426_v59 = vpop.f32.mrb[97].mxu0 }
 0x284   :  { %1744 = vst [vmem:[#allocation9 + $0x408] sm:$0xff] %v977_v58  ;;  %1746 = vst [vmem:[#allocation9 + $0x418] sm:$0xff] %v1426_v59 }
 0x286   :  { %v981_v60 = vpop.f32.mrb[98].mxu1  ;;  %v1430_v61 = vpop.f32.mrb[98].mxu0 }
 0x287   :  { %1747 = vst [vmem:[#allocation9 + $0x420] sm:$0xff] %v981_v60  ;;  %1749 = vst [vmem:[#allocation9 + $0x430] sm:$0xff] %v1430_v61  ;;  %v983_v62 = vpop.f32.mrb[99].mxu1  ;;  %v1432_v63 = vpop.f32.mrb[99].mxu0 }
 0x288   :  { %1748 = vst [vmem:[#allocation9 + $0x428] sm:$0xff] %v983_v62  ;;  %1750 = vst [vmem:[#allocation9 + $0x438] sm:$0xff] %v1432_v63 }
 0x28a   :  { %v987_v0 = vpop.f32.mrb[100].mxu1  ;;  %v1436_v1 = vpop.f32.mrb[100].mxu0 }
 0x28b   :  { %1751 = vst [vmem:[#allocation9 + $0x440] sm:$0xff] %v987_v0  ;;  %1753 = vst [vmem:[#allocation9 + $0x450] sm:$0xff] %v1436_v1  ;;  %v989_v2 = vpop.f32.mrb[101].mxu1  ;;  %v1438_v3 = vpop.f32.mrb[101].mxu0 }
 0x28c   :  { %1752 = vst [vmem:[#allocation9 + $0x448] sm:$0xff] %v989_v2  ;;  %1754 = vst [vmem:[#allocation9 + $0x458] sm:$0xff] %v1438_v3 }
 0x28e   :  { %v993_v4 = vpop.f32.mrb[102].mxu1  ;;  %v1442_v5 = vpop.f32.mrb[102].mxu0 }
 0x28f   :  { %1755 = vst [vmem:[#allocation9 + $0x460] sm:$0xff] %v993_v4  ;;  %1757 = vst [vmem:[#allocation9 + $0x470] sm:$0xff] %v1442_v5  ;;  %v995_v6 = vpop.f32.mrb[103].mxu1  ;;  %v1444_v7 = vpop.f32.mrb[103].mxu0 }
 0x290   :  { %1756 = vst [vmem:[#allocation9 + $0x468] sm:$0xff] %v995_v6  ;;  %1758 = vst [vmem:[#allocation9 + $0x478] sm:$0xff] %v1444_v7 }
 0x292   :  { %v999_v8 = vpop.f32.mrb[104].mxu1  ;;  %v1448_v9 = vpop.f32.mrb[104].mxu0 }
 0x293   :  { %1759 = vst [vmem:[#allocation9 + $0x480] sm:$0xff] %v999_v8  ;;  %1761 = vst [vmem:[#allocation9 + $0x490] sm:$0xff] %v1448_v9  ;;  %v1001_v10 = vpop.f32.mrb[105].mxu1  ;;  %v1450_v11 = vpop.f32.mrb[105].mxu0 }
 0x294   :  { %1760 = vst [vmem:[#allocation9 + $0x488] sm:$0xff] %v1001_v10  ;;  %1762 = vst [vmem:[#allocation9 + $0x498] sm:$0xff] %v1450_v11 }
 0x296   :  { %v1005_v12 = vpop.f32.mrb[106].mxu1  ;;  %v1454_v13 = vpop.f32.mrb[106].mxu0 }
 0x297   :  { %1763 = vst [vmem:[#allocation9 + $0x4a0] sm:$0xff] %v1005_v12  ;;  %1765 = vst [vmem:[#allocation9 + $0x4b0] sm:$0xff] %v1454_v13  ;;  %v1007_v14 = vpop.f32.mrb[107].mxu1  ;;  %v1456_v15 = vpop.f32.mrb[107].mxu0 }
 0x298   :  { %1764 = vst [vmem:[#allocation9 + $0x4a8] sm:$0xff] %v1007_v14  ;;  %1766 = vst [vmem:[#allocation9 + $0x4b8] sm:$0xff] %v1456_v15 }
 0x29a   :  { %v1011_v16 = vpop.f32.mrb[108].mxu1  ;;  %v1460_v17 = vpop.f32.mrb[108].mxu0 }
 0x29b   :  { %1767 = vst [vmem:[#allocation9 + $0x4c0] sm:$0xff] %v1011_v16  ;;  %1769 = vst [vmem:[#allocation9 + $0x4d0] sm:$0xff] %v1460_v17  ;;  %v1013_v18 = vpop.f32.mrb[109].mxu1  ;;  %v1462_v19 = vpop.f32.mrb[109].mxu0 }
 0x29c   :  { %1768 = vst [vmem:[#allocation9 + $0x4c8] sm:$0xff] %v1013_v18  ;;  %1770 = vst [vmem:[#allocation9 + $0x4d8] sm:$0xff] %v1462_v19 }
 0x29e   :  { %v1017_v20 = vpop.f32.mrb[110].mxu1  ;;  %v1466_v21 = vpop.f32.mrb[110].mxu0 }
 0x29f   :  { %1771 = vst [vmem:[#allocation9 + $0x4e0] sm:$0xff] %v1017_v20  ;;  %1773 = vst [vmem:[#allocation9 + $0x4f0] sm:$0xff] %v1466_v21  ;;  %v1019_v22 = vpop.f32.mrb[111].mxu1  ;;  %v1468_v23 = vpop.f32.mrb[111].mxu0 }
 0x2a0   :  { %1772 = vst [vmem:[#allocation9 + $0x4e8] sm:$0xff] %v1019_v22  ;;  %1774 = vst [vmem:[#allocation9 + $0x4f8] sm:$0xff] %v1468_v23 }
 0x2a2   :  { %v1023_v24 = vpop.f32.mrb[112].mxu1  ;;  %v1472_v25 = vpop.f32.mrb[112].mxu0 }
 0x2a3   :  { %1775 = vst [vmem:[#allocation9 + $0x500] sm:$0xff] %v1023_v24  ;;  %1777 = vst [vmem:[#allocation9 + $0x510] sm:$0xff] %v1472_v25  ;;  %v1025_v26 = vpop.f32.mrb[113].mxu1  ;;  %v1474_v27 = vpop.f32.mrb[113].mxu0 }
 0x2a4   :  { %1776 = vst [vmem:[#allocation9 + $0x508] sm:$0xff] %v1025_v26  ;;  %1778 = vst [vmem:[#allocation9 + $0x518] sm:$0xff] %v1474_v27 }
 0x2a6   :  { %v1029_v28 = vpop.f32.mrb[114].mxu1  ;;  %v1478_v29 = vpop.f32.mrb[114].mxu0 }
 0x2a7   :  { %1779 = vst [vmem:[#allocation9 + $0x520] sm:$0xff] %v1029_v28  ;;  %1781 = vst [vmem:[#allocation9 + $0x530] sm:$0xff] %v1478_v29  ;;  %v1031_v30 = vpop.f32.mrb[115].mxu1  ;;  %v1480_v31 = vpop.f32.mrb[115].mxu0 }
 0x2a8   :  { %1780 = vst [vmem:[#allocation9 + $0x528] sm:$0xff] %v1031_v30  ;;  %1782 = vst [vmem:[#allocation9 + $0x538] sm:$0xff] %v1480_v31 }
 0x2aa   :  { %v1035_v32 = vpop.f32.mrb[116].mxu1  ;;  %v1484_v33 = vpop.f32.mrb[116].mxu0 }
 0x2ab   :  { %1783 = vst [vmem:[#allocation9 + $0x540] sm:$0xff] %v1035_v32  ;;  %1785 = vst [vmem:[#allocation9 + $0x550] sm:$0xff] %v1484_v33  ;;  %v1037_v34 = vpop.f32.mrb[117].mxu1  ;;  %v1486_v35 = vpop.f32.mrb[117].mxu0 }
 0x2ac   :  { %1784 = vst [vmem:[#allocation9 + $0x548] sm:$0xff] %v1037_v34  ;;  %1786 = vst [vmem:[#allocation9 + $0x558] sm:$0xff] %v1486_v35 }
 0x2ae   :  { %v1041_v36 = vpop.f32.mrb[118].mxu1  ;;  %v1490_v37 = vpop.f32.mrb[118].mxu0 }
 0x2af   :  { %1787 = vst [vmem:[#allocation9 + $0x560] sm:$0xff] %v1041_v36  ;;  %1789 = vst [vmem:[#allocation9 + $0x570] sm:$0xff] %v1490_v37  ;;  %v1043_v38 = vpop.f32.mrb[119].mxu1  ;;  %v1492_v39 = vpop.f32.mrb[119].mxu0 }
 0x2b0   :  { %1788 = vst [vmem:[#allocation9 + $0x568] sm:$0xff] %v1043_v38  ;;  %1790 = vst [vmem:[#allocation9 + $0x578] sm:$0xff] %v1492_v39 }
 0x2b2   :  { %v1047_v40 = vpop.f32.mrb[120].mxu1  ;;  %v1496_v41 = vpop.f32.mrb[120].mxu0 }
 0x2b3   :  { %1791 = vst [vmem:[#allocation9 + $0x580] sm:$0xff] %v1047_v40  ;;  %1793 = vst [vmem:[#allocation9 + $0x590] sm:$0xff] %v1496_v41  ;;  %v1049_v42 = vpop.f32.mrb[121].mxu1  ;;  %v1498_v43 = vpop.f32.mrb[121].mxu0 }
 0x2b4   :  { %1792 = vst [vmem:[#allocation9 + $0x588] sm:$0xff] %v1049_v42  ;;  %1794 = vst [vmem:[#allocation9 + $0x598] sm:$0xff] %v1498_v43 }
 0x2b6   :  { %v1053_v44 = vpop.f32.mrb[122].mxu1  ;;  %v1502_v45 = vpop.f32.mrb[122].mxu0 }
 0x2b7   :  { %1795 = vst [vmem:[#allocation9 + $0x5a0] sm:$0xff] %v1053_v44  ;;  %1797 = vst [vmem:[#allocation9 + $0x5b0] sm:$0xff] %v1502_v45  ;;  %v1055_v46 = vpop.f32.mrb[123].mxu1  ;;  %v1504_v47 = vpop.f32.mrb[123].mxu0 }
 0x2b8   :  { %1796 = vst [vmem:[#allocation9 + $0x5a8] sm:$0xff] %v1055_v46  ;;  %1798 = vst [vmem:[#allocation9 + $0x5b8] sm:$0xff] %v1504_v47 }
 0x2ba   :  { %v1059_v48 = vpop.f32.mrb[124].mxu1  ;;  %v1508_v49 = vpop.f32.mrb[124].mxu0 }
 0x2bb   :  { %1799 = vst [vmem:[#allocation9 + $0x5c0] sm:$0xff] %v1059_v48  ;;  %1801 = vst [vmem:[#allocation9 + $0x5d0] sm:$0xff] %v1508_v49  ;;  %v1061_v50 = vpop.f32.mrb[125].mxu1  ;;  %v1510_v51 = vpop.f32.mrb[125].mxu0 }
 0x2bc   :  { %1800 = vst [vmem:[#allocation9 + $0x5c8] sm:$0xff] %v1061_v50  ;;  %1802 = vst [vmem:[#allocation9 + $0x5d8] sm:$0xff] %v1510_v51 }
 0x2be   :  { %v1065_v52 = vpop.f32.mrb[126].mxu1  ;;  %v1514_v53 = vpop.f32.mrb[126].mxu0 }
 0x2bf   :  { %1803 = vst [vmem:[#allocation9 + $0x5e0] sm:$0xff] %v1065_v52  ;;  %1805 = vst [vmem:[#allocation9 + $0x5f0] sm:$0xff] %v1514_v53  ;;  %v1067_v54 = vpop.f32.mrb[127].mxu1  ;;  %v1516_v55 = vpop.f32.mrb[127].mxu0 }
 0x2c0   :  { %1804 = vst [vmem:[#allocation9 + $0x5e8] sm:$0xff] %v1067_v54  ;;  %1806 = vst [vmem:[#allocation9 + $0x5f8] sm:$0xff] %v1516_v55 }
 0x2c2   :  { %v1071_v56 = vpop.f32.mrb[128].mxu1  ;;  %v1520_v57 = vpop.f32.mrb[128].mxu0 }
 0x2c3   :  { %1807 = vst [vmem:[#allocation9 + $0x600] sm:$0xff] %v1071_v56  ;;  %1809 = vst [vmem:[#allocation9 + $0x610] sm:$0xff] %v1520_v57  ;;  %v1073_v58 = vpop.f32.mrb[129].mxu1  ;;  %v1522_v59 = vpop.f32.mrb[129].mxu0 }
 0x2c4   :  { %1808 = vst [vmem:[#allocation9 + $0x608] sm:$0xff] %v1073_v58  ;;  %1810 = vst [vmem:[#allocation9 + $0x618] sm:$0xff] %v1522_v59 }
 0x2c6   :  { %v1077_v60 = vpop.f32.mrb[130].mxu1  ;;  %v1526_v61 = vpop.f32.mrb[130].mxu0 }
 0x2c7   :  { %1811 = vst [vmem:[#allocation9 + $0x620] sm:$0xff] %v1077_v60  ;;  %1813 = vst [vmem:[#allocation9 + $0x630] sm:$0xff] %v1526_v61  ;;  %v1079_v62 = vpop.f32.mrb[131].mxu1  ;;  %v1528_v63 = vpop.f32.mrb[131].mxu0 }
 0x2c8   :  { %1812 = vst [vmem:[#allocation9 + $0x628] sm:$0xff] %v1079_v62  ;;  %1814 = vst [vmem:[#allocation9 + $0x638] sm:$0xff] %v1528_v63 }
 0x2ca   :  { %v1083_v0 = vpop.f32.mrb[132].mxu1  ;;  %v1532_v1 = vpop.f32.mrb[132].mxu0 }
 0x2cb   :  { %1815 = vst [vmem:[#allocation9 + $0x640] sm:$0xff] %v1083_v0  ;;  %1817 = vst [vmem:[#allocation9 + $0x650] sm:$0xff] %v1532_v1  ;;  %v1085_v2 = vpop.f32.mrb[133].mxu1  ;;  %v1534_v3 = vpop.f32.mrb[133].mxu0 }
 0x2cc   :  { %1816 = vst [vmem:[#allocation9 + $0x648] sm:$0xff] %v1085_v2  ;;  %1818 = vst [vmem:[#allocation9 + $0x658] sm:$0xff] %v1534_v3 }
 0x2ce   :  { %v1089_v4 = vpop.f32.mrb[134].mxu1  ;;  %v1538_v5 = vpop.f32.mrb[134].mxu0 }
 0x2cf   :  { %1819 = vst [vmem:[#allocation9 + $0x660] sm:$0xff] %v1089_v4  ;;  %1821 = vst [vmem:[#allocation9 + $0x670] sm:$0xff] %v1538_v5  ;;  %v1091_v6 = vpop.f32.mrb[135].mxu1  ;;  %v1540_v7 = vpop.f32.mrb[135].mxu0 }
 0x2d0   :  { %1820 = vst [vmem:[#allocation9 + $0x668] sm:$0xff] %v1091_v6  ;;  %1822 = vst [vmem:[#allocation9 + $0x678] sm:$0xff] %v1540_v7 }
 0x2d2   :  { %v1095_v8 = vpop.f32.mrb[136].mxu1  ;;  %v1544_v9 = vpop.f32.mrb[136].mxu0 }
 0x2d3   :  { %1823 = vst [vmem:[#allocation9 + $0x680] sm:$0xff] %v1095_v8  ;;  %1825 = vst [vmem:[#allocation9 + $0x690] sm:$0xff] %v1544_v9  ;;  %v1097_v10 = vpop.f32.mrb[137].mxu1  ;;  %v1546_v11 = vpop.f32.mrb[137].mxu0 }
 0x2d4   :  { %1824 = vst [vmem:[#allocation9 + $0x688] sm:$0xff] %v1097_v10  ;;  %1826 = vst [vmem:[#allocation9 + $0x698] sm:$0xff] %v1546_v11 }
 0x2d6   :  { %v1101_v12 = vpop.f32.mrb[138].mxu1  ;;  %v1550_v13 = vpop.f32.mrb[138].mxu0 }
 0x2d7   :  { %1827 = vst [vmem:[#allocation9 + $0x6a0] sm:$0xff] %v1101_v12  ;;  %1829 = vst [vmem:[#allocation9 + $0x6b0] sm:$0xff] %v1550_v13  ;;  %v1103_v14 = vpop.f32.mrb[139].mxu1  ;;  %v1552_v15 = vpop.f32.mrb[139].mxu0 }
 0x2d8   :  { %1828 = vst [vmem:[#allocation9 + $0x6a8] sm:$0xff] %v1103_v14  ;;  %1830 = vst [vmem:[#allocation9 + $0x6b8] sm:$0xff] %v1552_v15 }
 0x2da   :  { %v1107_v16 = vpop.f32.mrb[140].mxu1  ;;  %v1556_v17 = vpop.f32.mrb[140].mxu0 }
 0x2db   :  { %1831 = vst [vmem:[#allocation9 + $0x6c0] sm:$0xff] %v1107_v16  ;;  %1833 = vst [vmem:[#allocation9 + $0x6d0] sm:$0xff] %v1556_v17  ;;  %v1109_v18 = vpop.f32.mrb[141].mxu1  ;;  %v1558_v19 = vpop.f32.mrb[141].mxu0 }
 0x2dc   :  { %1832 = vst [vmem:[#allocation9 + $0x6c8] sm:$0xff] %v1109_v18  ;;  %1834 = vst [vmem:[#allocation9 + $0x6d8] sm:$0xff] %v1558_v19 }
 0x2de   :  { %v1113_v20 = vpop.f32.mrb[142].mxu1  ;;  %v1562_v21 = vpop.f32.mrb[142].mxu0 }
 0x2df   :  { %1835 = vst [vmem:[#allocation9 + $0x6e0] sm:$0xff] %v1113_v20  ;;  %1837 = vst [vmem:[#allocation9 + $0x6f0] sm:$0xff] %v1562_v21  ;;  %v1115_v22 = vpop.f32.mrb[143].mxu1  ;;  %v1564_v23 = vpop.f32.mrb[143].mxu0 }
 0x2e0   :  { %1836 = vst [vmem:[#allocation9 + $0x6e8] sm:$0xff] %v1115_v22  ;;  %1838 = vst [vmem:[#allocation9 + $0x6f8] sm:$0xff] %v1564_v23 }
 0x2e2   :  { %v1119_v24 = vpop.f32.mrb[144].mxu1  ;;  %v1568_v25 = vpop.f32.mrb[144].mxu0 }
 0x2e3   :  { %1839 = vst [vmem:[#allocation9 + $0x700] sm:$0xff] %v1119_v24  ;;  %1841 = vst [vmem:[#allocation9 + $0x710] sm:$0xff] %v1568_v25  ;;  %v1121_v26 = vpop.f32.mrb[145].mxu1  ;;  %v1570_v27 = vpop.f32.mrb[145].mxu0 }
 0x2e4   :  { %1840 = vst [vmem:[#allocation9 + $0x708] sm:$0xff] %v1121_v26  ;;  %1842 = vst [vmem:[#allocation9 + $0x718] sm:$0xff] %v1570_v27 }
 0x2e6   :  { %v1125_v28 = vpop.f32.mrb[146].mxu1  ;;  %v1574_v29 = vpop.f32.mrb[146].mxu0 }
 0x2e7   :  { %1843 = vst [vmem:[#allocation9 + $0x720] sm:$0xff] %v1125_v28  ;;  %1845 = vst [vmem:[#allocation9 + $0x730] sm:$0xff] %v1574_v29  ;;  %v1127_v30 = vpop.f32.mrb[147].mxu1  ;;  %v1576_v31 = vpop.f32.mrb[147].mxu0 }
 0x2e8   :  { %1844 = vst [vmem:[#allocation9 + $0x728] sm:$0xff] %v1127_v30  ;;  %1846 = vst [vmem:[#allocation9 + $0x738] sm:$0xff] %v1576_v31 }
 0x2ea   :  { %v1131_v32 = vpop.f32.mrb[148].mxu1  ;;  %v1580_v33 = vpop.f32.mrb[148].mxu0 }
 0x2eb   :  { %1847 = vst [vmem:[#allocation9 + $0x740] sm:$0xff] %v1131_v32  ;;  %1849 = vst [vmem:[#allocation9 + $0x750] sm:$0xff] %v1580_v33  ;;  %v1133_v34 = vpop.f32.mrb[149].mxu1  ;;  %v1582_v35 = vpop.f32.mrb[149].mxu0 }
 0x2ec   :  { %1848 = vst [vmem:[#allocation9 + $0x748] sm:$0xff] %v1133_v34  ;;  %1850 = vst [vmem:[#allocation9 + $0x758] sm:$0xff] %v1582_v35 }
 0x2ee   :  { %v1137_v36 = vpop.f32.mrb[150].mxu1  ;;  %v1586_v37 = vpop.f32.mrb[150].mxu0 }
 0x2ef   :  { %1851 = vst [vmem:[#allocation9 + $0x760] sm:$0xff] %v1137_v36  ;;  %1853 = vst [vmem:[#allocation9 + $0x770] sm:$0xff] %v1586_v37  ;;  %v1139_v38 = vpop.f32.mrb[151].mxu1  ;;  %v1588_v39 = vpop.f32.mrb[151].mxu0 }
 0x2f0   :  { %1852 = vst [vmem:[#allocation9 + $0x768] sm:$0xff] %v1139_v38  ;;  %1854 = vst [vmem:[#allocation9 + $0x778] sm:$0xff] %v1588_v39 }
 0x2f2   :  { %v1143_v40 = vpop.f32.mrb[152].mxu1  ;;  %v1592_v41 = vpop.f32.mrb[152].mxu0 }
 0x2f3   :  { %1855 = vst [vmem:[#allocation9 + $0x780] sm:$0xff] %v1143_v40  ;;  %1857 = vst [vmem:[#allocation9 + $0x790] sm:$0xff] %v1592_v41  ;;  %v1145_v42 = vpop.f32.mrb[153].mxu1  ;;  %v1594_v43 = vpop.f32.mrb[153].mxu0 }
 0x2f4   :  { %1856 = vst [vmem:[#allocation9 + $0x788] sm:$0xff] %v1145_v42  ;;  %1858 = vst [vmem:[#allocation9 + $0x798] sm:$0xff] %v1594_v43 }
 0x2f6   :  { %v1149_v44 = vpop.f32.mrb[154].mxu1  ;;  %v1598_v45 = vpop.f32.mrb[154].mxu0 }
 0x2f7   :  { %1859 = vst [vmem:[#allocation9 + $0x7a0] sm:$0xff] %v1149_v44  ;;  %1861 = vst [vmem:[#allocation9 + $0x7b0] sm:$0xff] %v1598_v45  ;;  %v1151_v46 = vpop.f32.mrb[155].mxu1  ;;  %v1600_v47 = vpop.f32.mrb[155].mxu0 }
 0x2f8   :  { %1860 = vst [vmem:[#allocation9 + $0x7a8] sm:$0xff] %v1151_v46  ;;  %1862 = vst [vmem:[#allocation9 + $0x7b8] sm:$0xff] %v1600_v47 }
 0x2fa   :  { %v1155_v48 = vpop.f32.mrb[156].mxu1  ;;  %v1604_v49 = vpop.f32.mrb[156].mxu0 }
 0x2fb   :  { %1863 = vst [vmem:[#allocation9 + $0x7c0] sm:$0xff] %v1155_v48  ;;  %1865 = vst [vmem:[#allocation9 + $0x7d0] sm:$0xff] %v1604_v49  ;;  %v1157_v50 = vpop.f32.mrb[157].mxu1  ;;  %v1606_v51 = vpop.f32.mrb[157].mxu0 }
 0x2fc   :  { %1864 = vst [vmem:[#allocation9 + $0x7c8] sm:$0xff] %v1157_v50  ;;  %1866 = vst [vmem:[#allocation9 + $0x7d8] sm:$0xff] %v1606_v51 }
 0x2fe   :  { %v1161_v52 = vpop.f32.mrb[158].mxu1  ;;  %v1610_v53 = vpop.f32.mrb[158].mxu0 }
 0x2ff   :  { %1867 = vst [vmem:[#allocation9 + $0x7e0] sm:$0xff] %v1161_v52  ;;  %1869 = vst [vmem:[#allocation9 + $0x7f0] sm:$0xff] %v1610_v53  ;;  %v1163_v54 = vpop.f32.mrb[159].mxu1  ;;  %v1612_v55 = vpop.f32.mrb[159].mxu0 }
 0x300   :  { %1868 = vst [vmem:[#allocation9 + $0x7e8] sm:$0xff] %v1163_v54  ;;  %1870 = vst [vmem:[#allocation9 + $0x7f8] sm:$0xff] %v1612_v55 }
 0x301   :  { %2614 = shalt.err (!%p2611_p0)
}
 0x302   :  { %s2615_s25 = scalar_lea.hbm %s3014_s3, 32768 }
 0x303   :  { %p2616_p1 = scmp.ne.s32.totalorder %s3014_s3, %s2615_s25  ;;  %p2619_p2 = scmp.lt.u32.totalorder %s2615_s25, %s3014_s3 }
 0x305   :  { %p2621_p3 = pnand %p2619_p2, %p2616_p1 }
 0x307   :  { %2624 = shalt.err (!%p2621_p3)
}
 0x308   :  { %s2637_s30 = smov 512   ;;  %s2638_s4 = smov 32  }
 0x309   :  { %1882 = dma.vmem_to_hbm [thread:$0]  %s1877_s21, 32768, %s3014_s3, [#allocation5], %s2637_s30, %s2637_s30, %s2638_s4  }
 0x30a   :  { %2629 = dma.done.wait [#allocation5], 32768  }
 0x30b   :  { %2630 = vsyncadd [#allocation5], 4294934528 }
 0x30c   :  { %1886 = vsyncpa [#allocation4], 1 }
 0x30d   :  { %1887 = vsyncpa [#allocation7], 1 }
 0x30e   :  { %1888 = vsyncpa [#allocation5], 1 }

</bundles_post_ra>
